<compile_context>
chip_gen: v6e
topology: v6e:2x2x1
jax: 0.10.0
libtpu: 0.0.40
codegen_flags: <defaults>
</compile_context>

<pallas_src>
import functools

import jax
import jax.numpy as jnp
from jax.experimental import pallas as pl
from jax.experimental.pallas import tpu as pltpu

_LANE = 128
_VMEM_LIMIT = 32 * 1024 * 1024  # conservative: fits v5e/v6e/v7x scoped VMEM budgets


def _round_up(x, m):
    return ((x + m - 1) // m) * m


# ----------------------------------------------------------------------------
# The fused kernel: conv1 + conv2 + conv3 + fc + fc_q for ONE image per grid step
# ----------------------------------------------------------------------------
def _fused_cnn_kernel(cols_ref, w1_ref, b1_ref, w2_ref, b2_ref, w3_ref, b3_ref,
                      fcw_ref, fcb_ref, qw_ref, qb_ref, o_ref, *,
                      ntap2, npos2, ow2, oh3, ow3, kh3, kw3):
    # conv1: one MXU matmul over the conv2-tap-major duplicated patch rows.
    # (the /255 input scale is folded into w1)
    h1 = jnp.dot(cols_ref[...], w1_ref[...], preferred_element_type=jnp.float32)
    h1 = jnp.maximum(h1 + b1_ref[...], 0.0)                 # (ntap2*npos2, C1)

    # conv2: per-tap accumulation; tap t's rows are the contiguous static slice
    # h1[t*npos2:(t+1)*npos2] thanks to the tap-major row ordering of cols1.
    w2 = w2_ref[...]                                        # (ntap2, C1, C2)
    c2 = w2.shape[2]
    acc2 = jnp.zeros((npos2, c2), jnp.float32)
    for t in range(ntap2):
        acc2 = acc2 + jnp.dot(h1[t * npos2:(t + 1) * npos2, :], w2[t],
                              preferred_element_type=jnp.float32)
    h2 = jnp.maximum(acc2 + b2_ref[...], 0.0)               # (npos2, C2), rows (oy2, ox2)

    # conv3 (3x3, stride 1) + fc + fc_q, unrolled over the (tiny) conv3 output grid.
    # PyTorch's NCHW flatten order is pre-folded into fcw's per-position slices.
    w3 = w3_ref[...]                                        # (kh3*kw3, C2, C3)
    fcw = fcw_ref[...]                                      # (p3, C3, F)
    c3 = w3.shape[2]
    f = fcw.shape[2]
    accf = jnp.zeros((1, f), jnp.float32)
    for oy in range(oh3):
        for ox in range(ow3):
            acc3 = jnp.zeros((1, c3), jnp.float32)
            for i in range(kh3):
                for j in range(kw3):
                    r = (oy + i) * ow2 + (ox + j)
                    acc3 = acc3 + jnp.dot(h2[r:r + 1, :], w3[i * kw3 + j],
                                          preferred_element_type=jnp.float32)
            h3 = jnp.maximum(acc3 + b3_ref[...], 0.0)       # (1, C3)
            accf = accf + jnp.dot(h3, fcw[oy * ow3 + ox],
                                  preferred_element_type=jnp.float32)
    h = jnp.maximum(accf + fcb_ref[...], 0.0)               # (1, 512)

    # fc_q padded to 128 lanes -> lane-dense HBM store; sliced to n_actions outside.
    q = jnp.dot(h, qw_ref[...], preferred_element_type=jnp.float32) + qb_ref[...]
    o_ref[0] = q.astype(o_ref.dtype)


# ----------------------------------------------------------------------------
# XLA-side construction of conv1's patch matrix (from the network input only),
# rows duplicated and ordered (batch, conv2-tap, conv2-output-position).
# ----------------------------------------------------------------------------
def _build_conv1_patch_rows(x, geom):
    B = x.shape[0]
    kh1, kw1, s1 = geom["kh1"], geom["kw1"], geom["s1"]
    kh2, kw2, s2 = geom["kh2"], geom["kw2"], geom["s2"]
    oh1, ow1 = geom["oh1"], geom["ow1"]
    oh2, ow2 = geom["oh2"], geom["ow2"]

    taps = []
    for i in range(kh1):
        for j in range(kw1):
            taps.append(x[:, i:i + s1 * oh1:s1, j:j + s1 * ow1:s1, :])
    p = jnp.stack(taps, axis=3)                       # (B, oh1, ow1, kh1*kw1, C)
    p = p.reshape(B, oh1, ow1, -1)                    # (B, oh1, ow1, K1)

    rows = []
    for i2 in range(kh2):
        for j2 in range(kw2):
            sub = p[:, i2:i2 + s2 * oh2:s2, j2:j2 + s2 * ow2:s2, :]   # (B, oh2, ow2, K1)
            rows.append(sub.reshape(B, oh2 * ow2, -1))
    cols = jnp.concatenate(rows, axis=1)              # (B, ntap2*npos2, K1)
    return cols.reshape(B * geom["ntap2"] * geom["npos2"], -1)


# ----------------------------------------------------------------------------
# One-time parameter preparation (layout, flatten-fold, 1/255 fold, q padding)
# ----------------------------------------------------------------------------
def prepare_params(params, input_shape, n_actions):
    H, W, C = input_shape
    kh1, kw1, s1 = 8, 8, 4
    kh2, kw2, s2 = 4, 4, 2
    kh3, kw3, s3 = 3, 3, 1
    oh1, ow1 = (H - kh1) // s1 + 1, (W - kw1) // s1 + 1
    oh2, ow2 = (oh1 - kh2) // s2 + 1, (ow1 - kw2) // s2 + 1
    oh3, ow3 = (oh2 - kh3) // s3 + 1, (ow2 - kw3) // s3 + 1
    p3 = oh3 * ow3
    nq = _round_up(n_actions, _LANE)

    def conv_w_taps(w):
        # (Cout, Cin, kh, kw) -> (kh*kw, Cin, Cout)
        cout, cin, kh, kw = w.shape
        return jnp.transpose(w, (2, 3, 1, 0)).reshape(kh * kw, cin, cout).astype(jnp.float32)

    # conv1 weight as an im2col matrix (K rows ordered (ki, kj, c)) with /255 folded in.
    w1 = jnp.transpose(params["conv1_w"], (2, 3, 1, 0)).reshape(kh1 * kw1 * C, -1)
    w1 = (w1 / 255.0).astype(jnp.float32)

    # Fold PyTorch's NCHW flatten ordering (c3, oy3, ox3) into per-position fc slices.
    fcw = params["fc_w"].reshape(64, oh3, ow3, 512)
    fcw = jnp.transpose(fcw, (1, 2, 0, 3)).reshape(p3, 64, 512).astype(jnp.float32)

    pp = {
        "w1": w1,
        "b1": params["conv1_b"].reshape(1, -1).astype(jnp.float32),
        "w2": conv_w_taps(params["conv2_w"]),
        "b2": params["conv2_b"].reshape(1, -1).astype(jnp.float32),
        "w3": conv_w_taps(params["conv3_w"]),
        "b3": params["conv3_b"].reshape(1, -1).astype(jnp.float32),
        "fcw": fcw,
        "fcb": params["fc_b"].reshape(1, -1).astype(jnp.float32),
        "qw": jnp.pad(params["fcq_w"], ((0, 0), (0, nq - n_actions))).astype(jnp.float32),
        "qb": jnp.pad(params["fcq_b"], (0, nq - n_actions)).reshape(1, nq).astype(jnp.float32),
    }
    geom = dict(kh1=kh1, kw1=kw1, s1=s1, kh2=kh2, kw2=kw2, s2=s2,
                kh3=kh3, kw3=kw3, oh1=oh1, ow1=ow1, oh2=oh2, ow2=ow2,
                oh3=oh3, ow3=ow3, ntap2=kh2 * kw2, npos2=oh2 * ow2,
                p3=p3, n_actions=n_actions, nq=nq)
    return pp, geom


# ----------------------------------------------------------------------------
# CnnPolicy forward (algo='DQN', n_out=-1  ->  no C51 reshape / softmax)
# ----------------------------------------------------------------------------
def cnn_policy_forward(pp, geom, x):
    # x: (B, H, W, C), C <= 4 -> PyTorch permutes to NCHW; equivalent math done here.
    B = x.shape[0]
    cols = _build_conv1_patch_rows(x, geom)            # (B*ntap2*npos2, K1)
    K1 = cols.shape[1]
    ntap2, npos2 = geom["ntap2"], geom["npos2"]
    C1 = pp["w1"].shape[1]
    C2 = pp["w2"].shape[2]
    C3 = pp["w3"].shape[2]
    nk3 = pp["w3"].shape[0]
    F = pp["fcw"].shape[2]
    NQ = pp["qw"].shape[1]
    p3 = geom["p3"]

    kernel = functools.partial(
        _fused_cnn_kernel,
        ntap2=ntap2, npos2=npos2, ow2=geom["ow2"],
        oh3=geom["oh3"], ow3=geom["ow3"], kh3=geom["kh3"], kw3=geom["kw3"])

    flops = 2 * B * (ntap2 * npos2 * K1 * C1
                     + ntap2 * npos2 * C1 * C2
                     + p3 * (nk3 * C2 * C3 + C3 * F)
                     + F * NQ)
    wbytes = 4 * sum(int(v.size) for v in pp.values())
    cost = pl.CostEstimate(
        flops=flops, transcendentals=0,
        bytes_accessed=4 * int(cols.size) + wbytes + 4 * B * NQ)

    out = pl.pallas_call(
        kernel,
        out_shape=jax.ShapeDtypeStruct((B, 1, NQ), jnp.float32),
        grid=(B,),
        in_specs=[
            pl.BlockSpec((ntap2 * npos2, K1), lambda b: (b, 0)),
            pl.BlockSpec(pp["w1"].shape, lambda b: (0, 0)),
            pl.BlockSpec(pp["b1"].shape, lambda b: (0, 0)),
            pl.BlockSpec(pp["w2"].shape, lambda b: (0, 0, 0)),
            pl.BlockSpec(pp["b2"].shape, lambda b: (0, 0)),
            pl.BlockSpec(pp["w3"].shape, lambda b: (0, 0, 0)),
            pl.BlockSpec(pp["b3"].shape, lambda b: (0, 0)),
            pl.BlockSpec(pp["fcw"].shape, lambda b: (0, 0, 0)),
            pl.BlockSpec(pp["fcb"].shape, lambda b: (0, 0)),
            pl.BlockSpec(pp["qw"].shape, lambda b: (0, 0)),
            pl.BlockSpec(pp["qb"].shape, lambda b: (0, 0)),
        ],
        out_specs=pl.BlockSpec((1, 1, NQ), lambda b: (b, 0, 0)),
        compiler_params=pltpu.CompilerParams(
            dimension_semantics=("parallel",),
            vmem_limit_bytes=_VMEM_LIMIT,
        ),
        cost_estimate=cost,
    )(cols, pp["w1"], pp["b1"], pp["w2"], pp["b2"], pp["w3"], pp["b3"],
      pp["fcw"], pp["fcb"], pp["qw"], pp["qb"])

    q = out.reshape(B, NQ)[:, :geom["n_actions"]]
    return jnp.squeeze(q)


# ----------------------------------------------------------------------------
# Pure-JAX reference (same math, lax.conv, original PyTorch weight layout)
# ----------------------------------------------------------------------------
def ref_forward(params, x):
    def conv(h, w, b, stride):
        w_hwio = jnp.transpose(w, (2, 3, 1, 0))
        y = jax.lax.conv_general_dilated(
            h, w_hwio, (stride, stride), "VALID",
            dimension_numbers=("NHWC", "HWIO", "NHWC"))
        return jnp.maximum(y + b, 0.0)

    h = conv(x / 255.0, params["conv1_w"], params["conv1_b"], 4)
    h = conv(h, params["conv2_w"], params["conv2_b"], 2)
    h = conv(h, params["conv3_w"], params["conv3_b"], 1)
    h = jnp.transpose(h, (0, 3, 1, 2)).reshape(h.shape[0], -1)   # PyTorch flatten order
    h = jnp.maximum(h @ params["fc_w"] + params["fc_b"], 0.0)
    out = h @ params["fcq_w"] + params["fcq_b"]
    return jnp.squeeze(out)


# ----------------------------------------------------------------------------
# Deterministic synthetic parameter init (shapes from CnnPolicy.__init__)
# ----------------------------------------------------------------------------
def init_params(key, input_shape=(36, 36, 3), n_actions=4):
    H, W, C = input_shape
    oh1, ow1 = (H - 8) // 4 + 1, (W - 8) // 4 + 1
    oh2, ow2 = (oh1 - 4) // 2 + 1, (ow1 - 4) // 2 + 1
    oh3, ow3 = oh2 - 2, ow2 - 2
    fc_in = 64 * oh3 * ow3

    ks = jax.random.split(key, 5)

    def conv_w(k, cout, cin, ksz):
        fan_in = cin * ksz * ksz
        return jax.random.normal(k, (cout, cin, ksz, ksz), jnp.float32) * jnp.sqrt(2.0 / fan_in)

    def lin_w(k, fin, fout):
        return jax.random.normal(k, (fin, fout), jnp.float32) * jnp.sqrt(2.0 / fin)

    return {
        "conv1_w": conv_w(ks[0], 32, C, 8),   "conv1_b": jnp.zeros((32,), jnp.float32),
        "conv2_w": conv_w(ks[1], 64, 32, 4),  "conv2_b": jnp.zeros((64,), jnp.float32),
        "conv3_w": conv_w(ks[2], 64, 64, 3),  "conv3_b": jnp.zeros((64,), jnp.float32),
        "fc_w":    lin_w(ks[3], fc_in, 512),  "fc_b":    jnp.zeros((512,), jnp.float32),
        "fcq_w":   lin_w(ks[4], 512, n_actions),
        "fcq_b":   jnp.zeros((n_actions,), jnp.float32),
    }


if __name__ == "__main__":
    key = jax.random.PRNGKey(0)
    kp, kx = jax.random.split(key)

    input_shape = (36, 36, 3)   # small Atari-style frame (channels-last)
    batch = 2
    n_actions = 4

    params = init_params(kp, input_shape=input_shape, n_actions=n_actions)
    pp, geom = prepare_params(params, input_shape, n_actions)

    x = jax.random.uniform(
        kx, (batch, input_shape[0], input_shape[1], input_shape[2]),
        minval=0.0, maxval=255.0, dtype=jnp.float32)

    fwd = jax.jit(lambda inp: cnn_policy_forward(pp, geom, inp))
    out = jax.block_until_ready(fwd(x))
    ref = jax.block_until_ready(ref_forward(params, x))

    assert out.shape == (batch, n_actions), out.shape
    assert jnp.allclose(out, ref, atol=1e-4, rtol=1e-4), (out, ref)
    print("KERNEL_OK")
</pallas_src>

<mosaic_0001>
module attributes {stable_mosaic.version = 11 : i64} {
  func.func @_fused_cnn_kernel(%arg0: i32, %arg1: memref<144x192xf32, #tpu.memory_space<vmem>>, %arg2: memref<192x32xf32, #tpu.memory_space<vmem>>, %arg3: memref<1x32xf32, #tpu.memory_space<vmem>>, %arg4: memref<16x32x64xf32, #tpu.memory_space<vmem>>, %arg5: memref<1x64xf32, #tpu.memory_space<vmem>>, %arg6: memref<9x64x64xf32, #tpu.memory_space<vmem>>, %arg7: memref<1x64xf32, #tpu.memory_space<vmem>>, %arg8: memref<1x64x512xf32, #tpu.memory_space<vmem>>, %arg9: memref<1x512xf32, #tpu.memory_space<vmem>>, %arg10: memref<512x128xf32, #tpu.memory_space<vmem>>, %arg11: memref<1x128xf32, #tpu.memory_space<vmem>>, %arg12: memref<1x1x128xf32, #tpu.memory_space<vmem>>) attributes {dimension_semantics = [#tpu.dimension_semantics<parallel>], iteration_bounds = array<i64: 2>, scalar_prefetch = 0 : i64, scratch_operands = 0 : i64, tpu.core_type = #tpu.core_type<tc>, window_params = [{transform_indices = @transform_0, window_bounds = array<i64: 144, 192>}, {pipeline_mode = #tpu.pipeline_mode<synchronous>, transform_indices = @transform_1, window_bounds = array<i64: 192, 32>}, {pipeline_mode = #tpu.pipeline_mode<synchronous>, transform_indices = @transform_2, window_bounds = array<i64: 1, 32>}, {pipeline_mode = #tpu.pipeline_mode<synchronous>, transform_indices = @transform_3, window_bounds = array<i64: 16, 32, 64>}, {pipeline_mode = #tpu.pipeline_mode<synchronous>, transform_indices = @transform_4, window_bounds = array<i64: 1, 64>}, {pipeline_mode = #tpu.pipeline_mode<synchronous>, transform_indices = @transform_5, window_bounds = array<i64: 9, 64, 64>}, {pipeline_mode = #tpu.pipeline_mode<synchronous>, transform_indices = @transform_6, window_bounds = array<i64: 1, 64>}, {pipeline_mode = #tpu.pipeline_mode<synchronous>, transform_indices = @transform_7, window_bounds = array<i64: 1, 64, 512>}, {pipeline_mode = #tpu.pipeline_mode<synchronous>, transform_indices = @transform_8, window_bounds = array<i64: 1, 512>}, {pipeline_mode = #tpu.pipeline_mode<synchronous>, transform_indices = @transform_9, window_bounds = array<i64: 512, 128>}, {pipeline_mode = #tpu.pipeline_mode<synchronous>, transform_indices = @transform_10, window_bounds = array<i64: 1, 128>}, {transform_indices = @transform_11, window_bounds = array<i64: 1, 1, 128>}]} {
    %c0 = arith.constant 0 : index
    %c0_0 = arith.constant 0 : index
    %0 = vector.load %arg1[%c0, %c0_0] : memref<144x192xf32, #tpu.memory_space<vmem>>, vector<144x192xf32>
    %c0_1 = arith.constant 0 : index
    %c0_2 = arith.constant 0 : index
    %1 = vector.load %arg2[%c0_1, %c0_2] : memref<192x32xf32, #tpu.memory_space<vmem>>, vector<192x32xf32>
    %cst = arith.constant dense<0.000000e+00> : vector<144x32xf32>
    %2 = tpu.matmul %0, %1, %cst {dimension_numbers = #tpu.dot_dimension_numbers<[1], [0], [0], [1], [0, 0, 1, 1], [], []>} : vector<144x192xf32>, vector<192x32xf32>, vector<144x32xf32> -> vector<144x32xf32>
    %c0_3 = arith.constant 0 : index
    %c0_4 = arith.constant 0 : index
    %3 = vector.load %arg3[%c0_3, %c0_4] : memref<1x32xf32, #tpu.memory_space<vmem>>, vector<1x32xf32>
    %4 = vector.broadcast %3 : vector<1x32xf32> to vector<144x32xf32>
    %5 = arith.addf %2, %4 : vector<144x32xf32>
    %cst_5 = arith.constant 0.000000e+00 : f32
    %6 = vector.broadcast %cst_5 : f32 to vector<144x32xf32>
    %7 = arith.maximumf %5, %6 : vector<144x32xf32>
    %c0_6 = arith.constant 0 : index
    %c0_7 = arith.constant 0 : index
    %c0_8 = arith.constant 0 : index
    %8 = vector.load %arg4[%c0_6, %c0_7, %c0_8] : memref<16x32x64xf32, #tpu.memory_space<vmem>>, vector<16x32x64xf32>
    %cst_9 = arith.constant 0.000000e+00 : f32
    %9 = vector.broadcast %cst_9 : f32 to vector<9x64xf32>
    %10 = vector.extract_strided_slice %7 {offsets = [0, 0], sizes = [9, 32], strides = [1, 1]} : vector<144x32xf32> to vector<9x32xf32>
    %11 = vector.extract_strided_slice %8 {offsets = [0, 0, 0], sizes = [1, 32, 64], strides = [1, 1, 1]} : vector<16x32x64xf32> to vector<1x32x64xf32>
    %12 = vector.shape_cast %11 : vector<1x32x64xf32> to vector<32x64xf32>
    %cst_10 = arith.constant dense<0.000000e+00> : vector<9x64xf32>
    %13 = tpu.matmul %10, %12, %cst_10 {dimension_numbers = #tpu.dot_dimension_numbers<[1], [0], [0], [1], [0, 0, 1, 1], [], []>} : vector<9x32xf32>, vector<32x64xf32>, vector<9x64xf32> -> vector<9x64xf32>
    %14 = arith.addf %9, %13 : vector<9x64xf32>
    %15 = vector.extract_strided_slice %7 {offsets = [9, 0], sizes = [9, 32], strides = [1, 1]} : vector<144x32xf32> to vector<9x32xf32>
    %16 = vector.extract_strided_slice %8 {offsets = [1, 0, 0], sizes = [1, 32, 64], strides = [1, 1, 1]} : vector<16x32x64xf32> to vector<1x32x64xf32>
    %17 = vector.shape_cast %16 : vector<1x32x64xf32> to vector<32x64xf32>
    %cst_11 = arith.constant dense<0.000000e+00> : vector<9x64xf32>
    %18 = tpu.matmul %15, %17, %cst_11 {dimension_numbers = #tpu.dot_dimension_numbers<[1], [0], [0], [1], [0, 0, 1, 1], [], []>} : vector<9x32xf32>, vector<32x64xf32>, vector<9x64xf32> -> vector<9x64xf32>
    %19 = arith.addf %14, %18 : vector<9x64xf32>
    %20 = vector.extract_strided_slice %7 {offsets = [18, 0], sizes = [9, 32], strides = [1, 1]} : vector<144x32xf32> to vector<9x32xf32>
    %21 = vector.extract_strided_slice %8 {offsets = [2, 0, 0], sizes = [1, 32, 64], strides = [1, 1, 1]} : vector<16x32x64xf32> to vector<1x32x64xf32>
    %22 = vector.shape_cast %21 : vector<1x32x64xf32> to vector<32x64xf32>
    %cst_12 = arith.constant dense<0.000000e+00> : vector<9x64xf32>
    %23 = tpu.matmul %20, %22, %cst_12 {dimension_numbers = #tpu.dot_dimension_numbers<[1], [0], [0], [1], [0, 0, 1, 1], [], []>} : vector<9x32xf32>, vector<32x64xf32>, vector<9x64xf32> -> vector<9x64xf32>
    %24 = arith.addf %19, %23 : vector<9x64xf32>
    %25 = vector.extract_strided_slice %7 {offsets = [27, 0], sizes = [9, 32], strides = [1, 1]} : vector<144x32xf32> to vector<9x32xf32>
    %26 = vector.extract_strided_slice %8 {offsets = [3, 0, 0], sizes = [1, 32, 64], strides = [1, 1, 1]} : vector<16x32x64xf32> to vector<1x32x64xf32>
    %27 = vector.shape_cast %26 : vector<1x32x64xf32> to vector<32x64xf32>
    %cst_13 = arith.constant dense<0.000000e+00> : vector<9x64xf32>
    %28 = tpu.matmul %25, %27, %cst_13 {dimension_numbers = #tpu.dot_dimension_numbers<[1], [0], [0], [1], [0, 0, 1, 1], [], []>} : vector<9x32xf32>, vector<32x64xf32>, vector<9x64xf32> -> vector<9x64xf32>
    %29 = arith.addf %24, %28 : vector<9x64xf32>
    %30 = vector.extract_strided_slice %7 {offsets = [36, 0], sizes = [9, 32], strides = [1, 1]} : vector<144x32xf32> to vector<9x32xf32>
    %31 = vector.extract_strided_slice %8 {offsets = [4, 0, 0], sizes = [1, 32, 64], strides = [1, 1, 1]} : vector<16x32x64xf32> to vector<1x32x64xf32>
    %32 = vector.shape_cast %31 : vector<1x32x64xf32> to vector<32x64xf32>
    %cst_14 = arith.constant dense<0.000000e+00> : vector<9x64xf32>
    %33 = tpu.matmul %30, %32, %cst_14 {dimension_numbers = #tpu.dot_dimension_numbers<[1], [0], [0], [1], [0, 0, 1, 1], [], []>} : vector<9x32xf32>, vector<32x64xf32>, vector<9x64xf32> -> vector<9x64xf32>
    %34 = arith.addf %29, %33 : vector<9x64xf32>
    %35 = vector.extract_strided_slice %7 {offsets = [45, 0], sizes = [9, 32], strides = [1, 1]} : vector<144x32xf32> to vector<9x32xf32>
    %36 = vector.extract_strided_slice %8 {offsets = [5, 0, 0], sizes = [1, 32, 64], strides = [1, 1, 1]} : vector<16x32x64xf32> to vector<1x32x64xf32>
    %37 = vector.shape_cast %36 : vector<1x32x64xf32> to vector<32x64xf32>
    %cst_15 = arith.constant dense<0.000000e+00> : vector<9x64xf32>
    %38 = tpu.matmul %35, %37, %cst_15 {dimension_numbers = #tpu.dot_dimension_numbers<[1], [0], [0], [1], [0, 0, 1, 1], [], []>} : vector<9x32xf32>, vector<32x64xf32>, vector<9x64xf32> -> vector<9x64xf32>
    %39 = arith.addf %34, %38 : vector<9x64xf32>
    %40 = vector.extract_strided_slice %7 {offsets = [54, 0], sizes = [9, 32], strides = [1, 1]} : vector<144x32xf32> to vector<9x32xf32>
    %41 = vector.extract_strided_slice %8 {offsets = [6, 0, 0], sizes = [1, 32, 64], strides = [1, 1, 1]} : vector<16x32x64xf32> to vector<1x32x64xf32>
    %42 = vector.shape_cast %41 : vector<1x32x64xf32> to vector<32x64xf32>
    %cst_16 = arith.constant dense<0.000000e+00> : vector<9x64xf32>
    %43 = tpu.matmul %40, %42, %cst_16 {dimension_numbers = #tpu.dot_dimension_numbers<[1], [0], [0], [1], [0, 0, 1, 1], [], []>} : vector<9x32xf32>, vector<32x64xf32>, vector<9x64xf32> -> vector<9x64xf32>
    %44 = arith.addf %39, %43 : vector<9x64xf32>
    %45 = vector.extract_strided_slice %7 {offsets = [63, 0], sizes = [9, 32], strides = [1, 1]} : vector<144x32xf32> to vector<9x32xf32>
    %46 = vector.extract_strided_slice %8 {offsets = [7, 0, 0], sizes = [1, 32, 64], strides = [1, 1, 1]} : vector<16x32x64xf32> to vector<1x32x64xf32>
    %47 = vector.shape_cast %46 : vector<1x32x64xf32> to vector<32x64xf32>
    %cst_17 = arith.constant dense<0.000000e+00> : vector<9x64xf32>
    %48 = tpu.matmul %45, %47, %cst_17 {dimension_numbers = #tpu.dot_dimension_numbers<[1], [0], [0], [1], [0, 0, 1, 1], [], []>} : vector<9x32xf32>, vector<32x64xf32>, vector<9x64xf32> -> vector<9x64xf32>
    %49 = arith.addf %44, %48 : vector<9x64xf32>
    %50 = vector.extract_strided_slice %7 {offsets = [72, 0], sizes = [9, 32], strides = [1, 1]} : vector<144x32xf32> to vector<9x32xf32>
    %51 = vector.extract_strided_slice %8 {offsets = [8, 0, 0], sizes = [1, 32, 64], strides = [1, 1, 1]} : vector<16x32x64xf32> to vector<1x32x64xf32>
    %52 = vector.shape_cast %51 : vector<1x32x64xf32> to vector<32x64xf32>
    %cst_18 = arith.constant dense<0.000000e+00> : vector<9x64xf32>
    %53 = tpu.matmul %50, %52, %cst_18 {dimension_numbers = #tpu.dot_dimension_numbers<[1], [0], [0], [1], [0, 0, 1, 1], [], []>} : vector<9x32xf32>, vector<32x64xf32>, vector<9x64xf32> -> vector<9x64xf32>
    %54 = arith.addf %49, %53 : vector<9x64xf32>
    %55 = vector.extract_strided_slice %7 {offsets = [81, 0], sizes = [9, 32], strides = [1, 1]} : vector<144x32xf32> to vector<9x32xf32>
    %56 = vector.extract_strided_slice %8 {offsets = [9, 0, 0], sizes = [1, 32, 64], strides = [1, 1, 1]} : vector<16x32x64xf32> to vector<1x32x64xf32>
    %57 = vector.shape_cast %56 : vector<1x32x64xf32> to vector<32x64xf32>
    %cst_19 = arith.constant dense<0.000000e+00> : vector<9x64xf32>
    %58 = tpu.matmul %55, %57, %cst_19 {dimension_numbers = #tpu.dot_dimension_numbers<[1], [0], [0], [1], [0, 0, 1, 1], [], []>} : vector<9x32xf32>, vector<32x64xf32>, vector<9x64xf32> -> vector<9x64xf32>
    %59 = arith.addf %54, %58 : vector<9x64xf32>
    %60 = vector.extract_strided_slice %7 {offsets = [90, 0], sizes = [9, 32], strides = [1, 1]} : vector<144x32xf32> to vector<9x32xf32>
    %61 = vector.extract_strided_slice %8 {offsets = [10, 0, 0], sizes = [1, 32, 64], strides = [1, 1, 1]} : vector<16x32x64xf32> to vector<1x32x64xf32>
    %62 = vector.shape_cast %61 : vector<1x32x64xf32> to vector<32x64xf32>
    %cst_20 = arith.constant dense<0.000000e+00> : vector<9x64xf32>
    %63 = tpu.matmul %60, %62, %cst_20 {dimension_numbers = #tpu.dot_dimension_numbers<[1], [0], [0], [1], [0, 0, 1, 1], [], []>} : vector<9x32xf32>, vector<32x64xf32>, vector<9x64xf32> -> vector<9x64xf32>
    %64 = arith.addf %59, %63 : vector<9x64xf32>
    %65 = vector.extract_strided_slice %7 {offsets = [99, 0], sizes = [9, 32], strides = [1, 1]} : vector<144x32xf32> to vector<9x32xf32>
    %66 = vector.extract_strided_slice %8 {offsets = [11, 0, 0], sizes = [1, 32, 64], strides = [1, 1, 1]} : vector<16x32x64xf32> to vector<1x32x64xf32>
    %67 = vector.shape_cast %66 : vector<1x32x64xf32> to vector<32x64xf32>
    %cst_21 = arith.constant dense<0.000000e+00> : vector<9x64xf32>
    %68 = tpu.matmul %65, %67, %cst_21 {dimension_numbers = #tpu.dot_dimension_numbers<[1], [0], [0], [1], [0, 0, 1, 1], [], []>} : vector<9x32xf32>, vector<32x64xf32>, vector<9x64xf32> -> vector<9x64xf32>
    %69 = arith.addf %64, %68 : vector<9x64xf32>
    %70 = vector.extract_strided_slice %7 {offsets = [108, 0], sizes = [9, 32], strides = [1, 1]} : vector<144x32xf32> to vector<9x32xf32>
    %71 = vector.extract_strided_slice %8 {offsets = [12, 0, 0], sizes = [1, 32, 64], strides = [1, 1, 1]} : vector<16x32x64xf32> to vector<1x32x64xf32>
    %72 = vector.shape_cast %71 : vector<1x32x64xf32> to vector<32x64xf32>
    %cst_22 = arith.constant dense<0.000000e+00> : vector<9x64xf32>
    %73 = tpu.matmul %70, %72, %cst_22 {dimension_numbers = #tpu.dot_dimension_numbers<[1], [0], [0], [1], [0, 0, 1, 1], [], []>} : vector<9x32xf32>, vector<32x64xf32>, vector<9x64xf32> -> vector<9x64xf32>
    %74 = arith.addf %69, %73 : vector<9x64xf32>
    %75 = vector.extract_strided_slice %7 {offsets = [117, 0], sizes = [9, 32], strides = [1, 1]} : vector<144x32xf32> to vector<9x32xf32>
    %76 = vector.extract_strided_slice %8 {offsets = [13, 0, 0], sizes = [1, 32, 64], strides = [1, 1, 1]} : vector<16x32x64xf32> to vector<1x32x64xf32>
    %77 = vector.shape_cast %76 : vector<1x32x64xf32> to vector<32x64xf32>
    %cst_23 = arith.constant dense<0.000000e+00> : vector<9x64xf32>
    %78 = tpu.matmul %75, %77, %cst_23 {dimension_numbers = #tpu.dot_dimension_numbers<[1], [0], [0], [1], [0, 0, 1, 1], [], []>} : vector<9x32xf32>, vector<32x64xf32>, vector<9x64xf32> -> vector<9x64xf32>
    %79 = arith.addf %74, %78 : vector<9x64xf32>
    %80 = vector.extract_strided_slice %7 {offsets = [126, 0], sizes = [9, 32], strides = [1, 1]} : vector<144x32xf32> to vector<9x32xf32>
    %81 = vector.extract_strided_slice %8 {offsets = [14, 0, 0], sizes = [1, 32, 64], strides = [1, 1, 1]} : vector<16x32x64xf32> to vector<1x32x64xf32>
    %82 = vector.shape_cast %81 : vector<1x32x64xf32> to vector<32x64xf32>
    %cst_24 = arith.constant dense<0.000000e+00> : vector<9x64xf32>
    %83 = tpu.matmul %80, %82, %cst_24 {dimension_numbers = #tpu.dot_dimension_numbers<[1], [0], [0], [1], [0, 0, 1, 1], [], []>} : vector<9x32xf32>, vector<32x64xf32>, vector<9x64xf32> -> vector<9x64xf32>
    %84 = arith.addf %79, %83 : vector<9x64xf32>
    %85 = vector.extract_strided_slice %7 {offsets = [135, 0], sizes = [9, 32], strides = [1, 1]} : vector<144x32xf32> to vector<9x32xf32>
    %86 = vector.extract_strided_slice %8 {offsets = [15, 0, 0], sizes = [1, 32, 64], strides = [1, 1, 1]} : vector<16x32x64xf32> to vector<1x32x64xf32>
    %87 = vector.shape_cast %86 : vector<1x32x64xf32> to vector<32x64xf32>
    %cst_25 = arith.constant dense<0.000000e+00> : vector<9x64xf32>
    %88 = tpu.matmul %85, %87, %cst_25 {dimension_numbers = #tpu.dot_dimension_numbers<[1], [0], [0], [1], [0, 0, 1, 1], [], []>} : vector<9x32xf32>, vector<32x64xf32>, vector<9x64xf32> -> vector<9x64xf32>
    %89 = arith.addf %84, %88 : vector<9x64xf32>
    %c0_26 = arith.constant 0 : index
    %c0_27 = arith.constant 0 : index
    %90 = vector.load %arg5[%c0_26, %c0_27] : memref<1x64xf32, #tpu.memory_space<vmem>>, vector<1x64xf32>
    %91 = vector.broadcast %90 : vector<1x64xf32> to vector<9x64xf32>
    %92 = arith.addf %89, %91 : vector<9x64xf32>
    %cst_28 = arith.constant 0.000000e+00 : f32
    %93 = vector.broadcast %cst_28 : f32 to vector<9x64xf32>
    %94 = arith.maximumf %92, %93 : vector<9x64xf32>
    %c0_29 = arith.constant 0 : index
    %c0_30 = arith.constant 0 : index
    %c0_31 = arith.constant 0 : index
    %95 = vector.load %arg6[%c0_29, %c0_30, %c0_31] : memref<9x64x64xf32, #tpu.memory_space<vmem>>, vector<9x64x64xf32>
    %c0_32 = arith.constant 0 : index
    %c0_33 = arith.constant 0 : index
    %c0_34 = arith.constant 0 : index
    %96 = vector.load %arg8[%c0_32, %c0_33, %c0_34] : memref<1x64x512xf32, #tpu.memory_space<vmem>>, vector<1x64x512xf32>
    %cst_35 = arith.constant 0.000000e+00 : f32
    %97 = vector.broadcast %cst_35 : f32 to vector<1x512xf32>
    %cst_36 = arith.constant 0.000000e+00 : f32
    %98 = vector.broadcast %cst_36 : f32 to vector<1x64xf32>
    %99 = vector.extract_strided_slice %94 {offsets = [0, 0], sizes = [1, 64], strides = [1, 1]} : vector<9x64xf32> to vector<1x64xf32>
    %100 = vector.extract_strided_slice %95 {offsets = [0, 0, 0], sizes = [1, 64, 64], strides = [1, 1, 1]} : vector<9x64x64xf32> to vector<1x64x64xf32>
    %101 = vector.shape_cast %100 : vector<1x64x64xf32> to vector<64x64xf32>
    %cst_37 = arith.constant dense<0.000000e+00> : vector<1x64xf32>
    %102 = tpu.matmul %99, %101, %cst_37 {dimension_numbers = #tpu.dot_dimension_numbers<[1], [0], [0], [1], [0, 0, 1, 1], [], []>} : vector<1x64xf32>, vector<64x64xf32>, vector<1x64xf32> -> vector<1x64xf32>
    %103 = arith.addf %98, %102 : vector<1x64xf32>
    %104 = vector.extract_strided_slice %94 {offsets = [1, 0], sizes = [1, 64], strides = [1, 1]} : vector<9x64xf32> to vector<1x64xf32>
    %105 = vector.extract_strided_slice %95 {offsets = [1, 0, 0], sizes = [1, 64, 64], strides = [1, 1, 1]} : vector<9x64x64xf32> to vector<1x64x64xf32>
    %106 = vector.shape_cast %105 : vector<1x64x64xf32> to vector<64x64xf32>
    %cst_38 = arith.constant dense<0.000000e+00> : vector<1x64xf32>
    %107 = tpu.matmul %104, %106, %cst_38 {dimension_numbers = #tpu.dot_dimension_numbers<[1], [0], [0], [1], [0, 0, 1, 1], [], []>} : vector<1x64xf32>, vector<64x64xf32>, vector<1x64xf32> -> vector<1x64xf32>
    %108 = arith.addf %103, %107 : vector<1x64xf32>
    %109 = vector.extract_strided_slice %94 {offsets = [2, 0], sizes = [1, 64], strides = [1, 1]} : vector<9x64xf32> to vector<1x64xf32>
    %110 = vector.extract_strided_slice %95 {offsets = [2, 0, 0], sizes = [1, 64, 64], strides = [1, 1, 1]} : vector<9x64x64xf32> to vector<1x64x64xf32>
    %111 = vector.shape_cast %110 : vector<1x64x64xf32> to vector<64x64xf32>
    %cst_39 = arith.constant dense<0.000000e+00> : vector<1x64xf32>
    %112 = tpu.matmul %109, %111, %cst_39 {dimension_numbers = #tpu.dot_dimension_numbers<[1], [0], [0], [1], [0, 0, 1, 1], [], []>} : vector<1x64xf32>, vector<64x64xf32>, vector<1x64xf32> -> vector<1x64xf32>
    %113 = arith.addf %108, %112 : vector<1x64xf32>
    %114 = vector.extract_strided_slice %94 {offsets = [3, 0], sizes = [1, 64], strides = [1, 1]} : vector<9x64xf32> to vector<1x64xf32>
    %115 = vector.extract_strided_slice %95 {offsets = [3, 0, 0], sizes = [1, 64, 64], strides = [1, 1, 1]} : vector<9x64x64xf32> to vector<1x64x64xf32>
    %116 = vector.shape_cast %115 : vector<1x64x64xf32> to vector<64x64xf32>
    %cst_40 = arith.constant dense<0.000000e+00> : vector<1x64xf32>
    %117 = tpu.matmul %114, %116, %cst_40 {dimension_numbers = #tpu.dot_dimension_numbers<[1], [0], [0], [1], [0, 0, 1, 1], [], []>} : vector<1x64xf32>, vector<64x64xf32>, vector<1x64xf32> -> vector<1x64xf32>
    %118 = arith.addf %113, %117 : vector<1x64xf32>
    %119 = vector.extract_strided_slice %94 {offsets = [4, 0], sizes = [1, 64], strides = [1, 1]} : vector<9x64xf32> to vector<1x64xf32>
    %120 = vector.extract_strided_slice %95 {offsets = [4, 0, 0], sizes = [1, 64, 64], strides = [1, 1, 1]} : vector<9x64x64xf32> to vector<1x64x64xf32>
    %121 = vector.shape_cast %120 : vector<1x64x64xf32> to vector<64x64xf32>
    %cst_41 = arith.constant dense<0.000000e+00> : vector<1x64xf32>
    %122 = tpu.matmul %119, %121, %cst_41 {dimension_numbers = #tpu.dot_dimension_numbers<[1], [0], [0], [1], [0, 0, 1, 1], [], []>} : vector<1x64xf32>, vector<64x64xf32>, vector<1x64xf32> -> vector<1x64xf32>
    %123 = arith.addf %118, %122 : vector<1x64xf32>
    %124 = vector.extract_strided_slice %94 {offsets = [5, 0], sizes = [1, 64], strides = [1, 1]} : vector<9x64xf32> to vector<1x64xf32>
    %125 = vector.extract_strided_slice %95 {offsets = [5, 0, 0], sizes = [1, 64, 64], strides = [1, 1, 1]} : vector<9x64x64xf32> to vector<1x64x64xf32>
    %126 = vector.shape_cast %125 : vector<1x64x64xf32> to vector<64x64xf32>
    %cst_42 = arith.constant dense<0.000000e+00> : vector<1x64xf32>
    %127 = tpu.matmul %124, %126, %cst_42 {dimension_numbers = #tpu.dot_dimension_numbers<[1], [0], [0], [1], [0, 0, 1, 1], [], []>} : vector<1x64xf32>, vector<64x64xf32>, vector<1x64xf32> -> vector<1x64xf32>
    %128 = arith.addf %123, %127 : vector<1x64xf32>
    %129 = vector.extract_strided_slice %94 {offsets = [6, 0], sizes = [1, 64], strides = [1, 1]} : vector<9x64xf32> to vector<1x64xf32>
    %130 = vector.extract_strided_slice %95 {offsets = [6, 0, 0], sizes = [1, 64, 64], strides = [1, 1, 1]} : vector<9x64x64xf32> to vector<1x64x64xf32>
    %131 = vector.shape_cast %130 : vector<1x64x64xf32> to vector<64x64xf32>
    %cst_43 = arith.constant dense<0.000000e+00> : vector<1x64xf32>
    %132 = tpu.matmul %129, %131, %cst_43 {dimension_numbers = #tpu.dot_dimension_numbers<[1], [0], [0], [1], [0, 0, 1, 1], [], []>} : vector<1x64xf32>, vector<64x64xf32>, vector<1x64xf32> -> vector<1x64xf32>
    %133 = arith.addf %128, %132 : vector<1x64xf32>
    %134 = vector.extract_strided_slice %94 {offsets = [7, 0], sizes = [1, 64], strides = [1, 1]} : vector<9x64xf32> to vector<1x64xf32>
    %135 = vector.extract_strided_slice %95 {offsets = [7, 0, 0], sizes = [1, 64, 64], strides = [1, 1, 1]} : vector<9x64x64xf32> to vector<1x64x64xf32>
    %136 = vector.shape_cast %135 : vector<1x64x64xf32> to vector<64x64xf32>
    %cst_44 = arith.constant dense<0.000000e+00> : vector<1x64xf32>
    %137 = tpu.matmul %134, %136, %cst_44 {dimension_numbers = #tpu.dot_dimension_numbers<[1], [0], [0], [1], [0, 0, 1, 1], [], []>} : vector<1x64xf32>, vector<64x64xf32>, vector<1x64xf32> -> vector<1x64xf32>
    %138 = arith.addf %133, %137 : vector<1x64xf32>
    %139 = vector.extract_strided_slice %94 {offsets = [8, 0], sizes = [1, 64], strides = [1, 1]} : vector<9x64xf32> to vector<1x64xf32>
    %140 = vector.extract_strided_slice %95 {offsets = [8, 0, 0], sizes = [1, 64, 64], strides = [1, 1, 1]} : vector<9x64x64xf32> to vector<1x64x64xf32>
    %141 = vector.shape_cast %140 : vector<1x64x64xf32> to vector<64x64xf32>
    %cst_45 = arith.constant dense<0.000000e+00> : vector<1x64xf32>
    %142 = tpu.matmul %139, %141, %cst_45 {dimension_numbers = #tpu.dot_dimension_numbers<[1], [0], [0], [1], [0, 0, 1, 1], [], []>} : vector<1x64xf32>, vector<64x64xf32>, vector<1x64xf32> -> vector<1x64xf32>
    %143 = arith.addf %138, %142 : vector<1x64xf32>
    %c0_46 = arith.constant 0 : index
    %c0_47 = arith.constant 0 : index
    %144 = vector.load %arg7[%c0_46, %c0_47] : memref<1x64xf32, #tpu.memory_space<vmem>>, vector<1x64xf32>
    %145 = arith.addf %143, %144 : vector<1x64xf32>
    %cst_48 = arith.constant 0.000000e+00 : f32
    %146 = vector.broadcast %cst_48 : f32 to vector<1x64xf32>
    %147 = arith.maximumf %145, %146 : vector<1x64xf32>
    %148 = vector.shape_cast %96 : vector<1x64x512xf32> to vector<64x512xf32>
    %cst_49 = arith.constant dense<0.000000e+00> : vector<1x512xf32>
    %149 = tpu.matmul %147, %148, %cst_49 {dimension_numbers = #tpu.dot_dimension_numbers<[1], [0], [0], [1], [0, 0, 1, 1], [], []>} : vector<1x64xf32>, vector<64x512xf32>, vector<1x512xf32> -> vector<1x512xf32>
    %150 = arith.addf %97, %149 : vector<1x512xf32>
    %c0_50 = arith.constant 0 : index
    %c0_51 = arith.constant 0 : index
    %151 = vector.load %arg9[%c0_50, %c0_51] : memref<1x512xf32, #tpu.memory_space<vmem>>, vector<1x512xf32>
    %152 = arith.addf %150, %151 : vector<1x512xf32>
    %cst_52 = arith.constant 0.000000e+00 : f32
    %153 = vector.broadcast %cst_52 : f32 to vector<1x512xf32>
    %154 = arith.maximumf %152, %153 : vector<1x512xf32>
    %c0_53 = arith.constant 0 : index
    %c0_54 = arith.constant 0 : index
    %155 = vector.load %arg10[%c0_53, %c0_54] : memref<512x128xf32, #tpu.memory_space<vmem>>, vector<512x128xf32>
    %cst_55 = arith.constant dense<0.000000e+00> : vector<1x128xf32>
    %156 = tpu.matmul %154, %155, %cst_55 {dimension_numbers = #tpu.dot_dimension_numbers<[1], [0], [0], [1], [0, 0, 1, 1], [], []>} : vector<1x512xf32>, vector<512x128xf32>, vector<1x128xf32> -> vector<1x128xf32>
    %c0_56 = arith.constant 0 : index
    %c0_57 = arith.constant 0 : index
    %157 = vector.load %arg11[%c0_56, %c0_57] : memref<1x128xf32, #tpu.memory_space<vmem>>, vector<1x128xf32>
    %158 = arith.addf %156, %157 : vector<1x128xf32>
    %c0_58 = arith.constant 0 : index
    %c0_59 = arith.constant 0 : index
    %c0_60 = arith.constant 0 : index
    %159 = vector.load %arg12[%c0_58, %c0_59, %c0_60] : memref<1x1x128xf32, #tpu.memory_space<vmem>>, vector<1x1x128xf32>
    %160 = vector.shape_cast %159 : vector<1x1x128xf32> to vector<1x128xf32>
    %161 = vector.shape_cast %158 : vector<1x128xf32> to vector<1x1x128xf32>
    tpu.vector_store %arg12[%c0_58, %c0_59, %c0_60], %161 {strides = array<i32>} : memref<1x1x128xf32, #tpu.memory_space<vmem>>, vector<1x1x128xf32>,
    return
  }
  func.func @transform_0(%arg0: i32) -> (i32, i32) {
    %c0_i32 = arith.constant 0 : i32
    %c0_i32_0 = arith.constant 0 : i32
    return %arg0, %c0_i32 : i32, i32
  }
  func.func @transform_1(%arg0: i32) -> (i32, i32) {
    %c0_i32 = arith.constant 0 : i32
    %c0_i32_0 = arith.constant 0 : i32
    %c0_i32_1 = arith.constant 0 : i32
    return %c0_i32, %c0_i32_0 : i32, i32
  }
  func.func @transform_2(%arg0: i32) -> (i32, i32) {
    %c0_i32 = arith.constant 0 : i32
    %c0_i32_0 = arith.constant 0 : i32
    %c0_i32_1 = arith.constant 0 : i32
    return %c0_i32, %c0_i32_0 : i32, i32
  }
  func.func @transform_3(%arg0: i32) -> (i32, i32, i32) {
    %c0_i32 = arith.constant 0 : i32
    %c0_i32_0 = arith.constant 0 : i32
    %c0_i32_1 = arith.constant 0 : i32
    %c0_i32_2 = arith.constant 0 : i32
    return %c0_i32, %c0_i32_0, %c0_i32_1 : i32, i32, i32
  }
  func.func @transform_4(%arg0: i32) -> (i32, i32) {
    %c0_i32 = arith.constant 0 : i32
    %c0_i32_0 = arith.constant 0 : i32
    %c0_i32_1 = arith.constant 0 : i32
    return %c0_i32, %c0_i32_0 : i32, i32
  }
  func.func @transform_5(%arg0: i32) -> (i32, i32, i32) {
    %c0_i32 = arith.constant 0 : i32
    %c0_i32_0 = arith.constant 0 : i32
    %c0_i32_1 = arith.constant 0 : i32
    %c0_i32_2 = arith.constant 0 : i32
    return %c0_i32, %c0_i32_0, %c0_i32_1 : i32, i32, i32
  }
  func.func @transform_6(%arg0: i32) -> (i32, i32) {
    %c0_i32 = arith.constant 0 : i32
    %c0_i32_0 = arith.constant 0 : i32
    %c0_i32_1 = arith.constant 0 : i32
    return %c0_i32, %c0_i32_0 : i32, i32
  }
  func.func @transform_7(%arg0: i32) -> (i32, i32, i32) {
    %c0_i32 = arith.constant 0 : i32
    %c0_i32_0 = arith.constant 0 : i32
    %c0_i32_1 = arith.constant 0 : i32
    %c0_i32_2 = arith.constant 0 : i32
    return %c0_i32, %c0_i32_0, %c0_i32_1 : i32, i32, i32
  }
  func.func @transform_8(%arg0: i32) -> (i32, i32) {
    %c0_i32 = arith.constant 0 : i32
    %c0_i32_0 = arith.constant 0 : i32
    %c0_i32_1 = arith.constant 0 : i32
    return %c0_i32, %c0_i32_0 : i32, i32
  }
  func.func @transform_9(%arg0: i32) -> (i32, i32) {
    %c0_i32 = arith.constant 0 : i32
    %c0_i32_0 = arith.constant 0 : i32
    %c0_i32_1 = arith.constant 0 : i32
    return %c0_i32, %c0_i32_0 : i32, i32
  }
  func.func @transform_10(%arg0: i32) -> (i32, i32) {
    %c0_i32 = arith.constant 0 : i32
    %c0_i32_0 = arith.constant 0 : i32
    %c0_i32_1 = arith.constant 0 : i32
    return %c0_i32, %c0_i32_0 : i32, i32
  }
  func.func @transform_11(%arg0: i32) -> (i32, i32, i32) {
    %c0_i32 = arith.constant 0 : i32
    %c0_i32_0 = arith.constant 0 : i32
    %c0_i32_1 = arith.constant 0 : i32
    return %arg0, %c0_i32, %c0_i32_0 : i32, i32, i32
  }
}

</mosaic_0001>

<bundles_post_ra>
// kernel: _lambda_.1
= control target key start
LH: loop header
LB: loop body
LE: loop exit
PB: predicated region body
PF: predicated region fallthrough
CT: control target
= control target key end

     0   :  { %s5326_s0 = inlined_call_operand.vmem [shape: f32[288,192], index: 0, kind: input, shape index: {}]   ;;  %s5327_s1 = inlined_call_operand.vmem [shape: f32[192,32], index: 1, kind: input, shape index: {}]   ;;  %s5328_s2 = inlined_call_operand.vmem [shape: f32[1,32], index: 2, kind: input, shape index: {}]   ;;  %s5329_s3 = inlined_call_operand.vmem [shape: f32[16,32,64], index: 3, kind: input, shape index: {}]   ;;  %s5330_s4 = inlined_call_operand.vmem [shape: f32[1,64], index: 4, kind: input, shape index: {}, may-alias: {4,6}]   ;;  %s5331_s5 = inlined_call_operand.vmem [shape: f32[9,64,64], index: 5, kind: input, shape index: {}]   ;;  %s5332_s6 = inlined_call_operand.vmem [shape: f32[1,64], index: 6, kind: input, shape index: {}, may-alias: {4,6}]   ;;  %s5333_s7 = inlined_call_operand.vmem [shape: f32[1,64,512], index: 7, kind: input, shape index: {}]   ;;  %s5334_s8 = inlined_call_operand.vmem [shape: f32[1,512], index: 8, kind: input, shape index: {}]   ;;  %s5335_s9 = inlined_call_operand.vmem [shape: f32[512,128], index: 9, kind: input, shape index: {}]   ;;  %s5336_s10 = inlined_call_operand.vmem [shape: f32[1,128], index: 10, kind: input, shape index: {}]   ;;  %s5337_s11 = inlined_call_operand.hbm [shape: f32[2,1,128], index: 11, kind: output, shape index: {}]  }
   0x1   :  { %5338 = sst [smem:[#allocation5_spill]] %s5326_s0 }
   0x2   :  { %5339 = sst [smem:[#allocation6_spill]] %s5327_s1 }
   0x3   :  { %16 = vsyncpa [#allocation3], 0 }
   0x4   :  { %18 = vsyncpa [#allocation3 + $0x1], 0  ;;  %s4168_s17 = smov 0   ;;  %s4170_s18 = smov 0  }
   0x5   :  { %s4172_s19 = smov 0   ;;  %s4174_s20 = smov 0  }
   0x6 LB: > { %s4189_s21 = sadd.s32 4294967295, %s4103_s20   ;;  %s3335_s22 = sadd.s32 4294967294, %s4103_s20   ;;  %s4103_s20 = sphi %s4174_s20, %s5347_s20   ;;  %s4099_s19 = sphi %s4172_s19, %s5346_s19   ;;  %s4095_s18 = sphi %s4170_s18, %s5345_s18   ;;  %s4091_s17 = sphi %s4168_s17, %s5344_s17  }
   0x7   : > { %s4193_s23 = sadd.s32 1, %s4103_s20   ;;  %s267_s24 = sadd.s32 1, %s4099_s19 }
   0x8   : > { %s264_s25 = ssub.s32 %s4103_s20, %s4193_s23  ;;  %p277_p0 = scmp.ne.s32.totalorder %s4099_s19, %s4095_s18 }
   0x9   : > { %p265_p1 = scmp.eq.s32.totalorder %s264_s25, 0  ;;  %p278_p2 = scmp.eq.s32.totalorder %s4189_s21, 1 }
   0xa   : > { %p283_p3 = scmp.ne.s32.totalorder %s4095_s18, %s4091_s17  ;;  %p284_p4 = scmp.eq.s32.totalorder %s3335_s22, 1 }
   0xb   : > { %s4204_s26 = scalar_select %p265_p1, %s4099_s19, %s267_s24  }
   0xc   : > { %p4206_p5 = por %p278_p2, %p277_p0  ;;  %p4210_p6 = por %p284_p4, %p283_p3 }
   0xd   : > { %p3338_p7 = scmp.ge.s32.totalorder %s4103_s20, 1  ;;  %p342_p8 = scmp.lt.s32.totalorder %s4103_s20, 3 }
   0xf   : > { %p343_p9 = pnand %p3338_p7, %p342_p8 }
  0x10   : > { %s5342_s1 = sld [smem:[#allocation6_spill]] (!%p343_p9)  ;;  %s382_s12 = smul.u32 (!%p343_p9), 18, %s4189_s21 }
  0x11   : > { %346 = sbr.rel (%p343_p9) target bundleno = 1284 (0x504), region = 64  ;;  %s5343_s0 = sld [smem:[#allocation5_spill]] (!%p343_p9) }
  0x12   : > { %p383_p10 = scmp.lt.s32.totalorder (!%p343_p9), %s382_s12, 35  ;;  %s3404_s13 = sshll.u32 (!%p343_p9), %s4189_s21, 4 }
  0x13   : > { %s4107_s29 = smov (!%p343_p9), [#allocation2]  }
  0x14   : > { %s4047_s30 = sshll.u32 (!%p343_p9), %s4107_s29, 4  ;;  %s4048_s30 = int_to_ptr.vmem [resolvable:$false] %s4047_s30 }
  0x15   : > { %s4049_s21 = scalar_lea.vmem (!%p343_p9), %s4048_s30, 32 }
  0x16   : > { %v440_v0 = vld [vmem:[%s5342_s1 + $0x78] sm:$0xff]  ;;  %v4105_v1 = vmov 0.0   ;;  %v439_v2 = vld [vmem:[%s5342_s1 + $0x70] sm:$0xff]  ;;  %v438_v3 = vld [vmem:[%s5342_s1 + $0x68] sm:$0xff]  ;;  %s5349_s12 = smov (!%p383_p10, %s382_s12), 35  ;;  %vm456_vm0 = vcmask 523264  }
  0x17   : > { %511 = vmatprep.subr.mxu0 %v4105_v1  ;;  %v437_v4 = vld [vmem:[%s5342_s1 + $0x60] sm:$0xff]  ;;  %s3407_s25 = sshll.u32 %s5349_s12, 4  ;;  %v436_v5 = vld [vmem:[%s5342_s1 + $0x58] sm:$0xff]  ;;  %v435_v7 = vld [vmem:[%s5342_s1 + $0x50] sm:$0xff]  ;;  %vm750_vm1 = vcmask 1046528   ;;  %vm754_vm2 = vcmask 261120   ;;  %s3278_s12 = scalar_lea.hbm %s5337_s11, %s3404_s13 }
  0x18   : > { %512 = vmatpush1.msra.mxu0 %v440_v0  ;;  %s4239_s15 = scalar_lea.vmem %s5343_s0, %s3407_s25  ;;  %v434_v8 = vld [vmem:[%s5342_s1 + $0x48] sm:$0xff]  ;;  %v433_v9 = vld [vmem:[%s5342_s1 + $0x40] sm:$0xff]  ;;  %v432_v10 = vld [vmem:[%s5342_s1 + $0x38] sm:$0xff]  ;;  %vm915_vm3 = vcmask 1045504   ;;  %vm1001_vm4 = vcmask 1044480   ;;  %vm1087_vm5 = vcmask 1043456  }
  0x19   : > { %513 = vmatprep.subr.mxu0 %v4105_v1  ;;  %v390_v6 = vld [vmem:[%s4239_s15 + $0x8] sm:$0xff]  ;;  %v431_v11 = vld [vmem:[%s5342_s1 + $0x30] sm:$0xff]  ;;  %v429_v13 = vld [vmem:[%s5342_s1 + $0x20] sm:$0xff]  ;;  %vm1173_vm6 = vcmask 1042432   ;;  %vm1259_vm7 = vcmask 1041408   ;;  %vm1345_vm8 = vcmask 1040384  }
  0x1a   : > { %514 = vmatpush1.msra.mxu0 %v439_v2  ;;  %3342 = vmatprep.mubr.msk.f32.mxu0 %vm456_vm0, %v390_v6  ;;  %v430_v12 = vld [vmem:[%s5342_s1 + $0x28] sm:$0xff]  ;;  %v428_v14 = vld [vmem:[%s5342_s1 + $0x18] sm:$0xff]  ;;  %v427_v15 = vld [vmem:[%s5342_s1 + $0x10] sm:$0xff]  ;;  %vm4106_vm9 = vmmov 0   ;;  %s380_s25 = sand.u32 1, %s4095_s18  }
  0x1b   : > { %515 = vmatprep.subr.mxu0 %v4105_v1  ;;  %v426_v16 = vld [vmem:[%s5342_s1 + $0x8] sm:$0xff]  ;;  %v425_v17 = vld [vmem:[%s5342_s1] sm:$0xff]  ;;  %v448_v18 = vld [vmem:[%s5342_s1 + $0xb8] sm:$0xff]  ;;  %s3268_s24 = scalar_lea.sflag [#allocation3], %s380_s25 }
  0x1c   : > { %516 = vmatpush1.msra.mxu0 %v438_v3  ;;  %v447_v19 = vld [vmem:[%s5342_s1 + $0xb0] sm:$0xff]  ;;  %v446_v20 = vld [vmem:[%s5342_s1 + $0xa8] sm:$0xff]  ;;  %v445_v21 = vld [vmem:[%s5342_s1 + $0xa0] sm:$0xff] }
  0x1d   : > { %517 = vmatprep.subr.mxu0 %v4105_v1  ;;  %v444_v22 = vld [vmem:[%s5342_s1 + $0x98] sm:$0xff]  ;;  %v443_v23 = vld [vmem:[%s5342_s1 + $0x90] sm:$0xff]  ;;  %v442_v24 = vld [vmem:[%s5342_s1 + $0x88] sm:$0xff] }
  0x1e   : > { %518 = vmatpush1.msra.mxu0 %v437_v4  ;;  %v441_v25 = vld [vmem:[%s5342_s1 + $0x80] sm:$0xff]  ;;  %v392_v27 = vld [vmem:[%s4239_s15 + $0x18] sm:$0xff]  ;;  %v391_v28 = vld [vmem:[%s4239_s15 + $0x10] sm:$0xff] }
  0x1f   : > { %519 = vmatprep.subr.mxu0 %v4105_v1  ;;  %v389_v26 = vld [vmem:[%s4239_s15] sm:$0xff]  ;;  %v394_v29 = vld [vmem:[%s4239_s15 + $0x28] sm:$0xff]  ;;  %v396_v31 = vld [vmem:[%s4239_s15 + $0x38] sm:$0xff] }
  0x20   : > { %520 = vmatpush1.msra.mxu0 %v436_v5  ;;  %v393_v30 = vld [vmem:[%s4239_s15 + $0x20] sm:$0xff]  ;;  %v395_v32 = vld [vmem:[%s4239_s15 + $0x30] sm:$0xff]  ;;  %v398_v33 = vld [vmem:[%s4239_s15 + $0x48] sm:$0xff] }
  0x21   : > { %521 = vmatprep.subr.mxu0 %v4105_v1  ;;  %v397_v34 = vld [vmem:[%s4239_s15 + $0x40] sm:$0xff]  ;;  %v400_v35 = vld [vmem:[%s4239_s15 + $0x58] sm:$0xff]  ;;  %v399_v36 = vld [vmem:[%s4239_s15 + $0x50] sm:$0xff] }
  0x22   : > { %522 = vmatpush1.msra.mxu0 %v435_v7  ;;  %v402_v37 = vld [vmem:[%s4239_s15 + $0x68] sm:$0xff]  ;;  %v401_v38 = vld [vmem:[%s4239_s15 + $0x60] sm:$0xff]  ;;  %v404_v39 = vld [vmem:[%s4239_s15 + $0x78] sm:$0xff] }
  0x23   : > { %523 = vmatprep.subr.mxu0 %v4105_v1  ;;  %v403_v40 = vld [vmem:[%s4239_s15 + $0x70] sm:$0xff]  ;;  %v406_v41 = vld [vmem:[%s4239_s15 + $0x88] sm:$0xff]  ;;  %v405_v42 = vld [vmem:[%s4239_s15 + $0x80] sm:$0xff] }
  0x24   : > { %524 = vmatpush1.msra.mxu0 %v434_v8  ;;  %v408_v43 = vld [vmem:[%s4239_s15 + $0x98] sm:$0xff]  ;;  %v407_v44 = vld [vmem:[%s4239_s15 + $0x90] sm:$0xff]  ;;  %v410_v45 = vld [vmem:[%s4239_s15 + $0xa8] sm:$0xff] }
  0x25   : > { %525 = vmatprep.subr.mxu0 %v4105_v1  ;;  %v409_v46 = vld [vmem:[%s4239_s15 + $0xa0] sm:$0xff]  ;;  %v412_v47 = vld [vmem:[%s4239_s15 + $0xb8] sm:$0xff]  ;;  %v411_v48 = vld [vmem:[%s4239_s15 + $0xb0] sm:$0xff] }
  0x26   : > { %526 = vmatpush1.msra.mxu0 %v433_v9  ;;  %v414_v49 = vld [vmem:[%s4239_s15 + $0xc8] sm:$0xff]  ;;  %v413_v50 = vld [vmem:[%s4239_s15 + $0xc0] sm:$0xff]  ;;  %v416_v51 = vld [vmem:[%s4239_s15 + $0xd8] sm:$0xff] }
  0x27   : > { %527 = vmatprep.subr.mxu0 %v4105_v1  ;;  %v415_v52 = vld [vmem:[%s4239_s15 + $0xd0] sm:$0xff]  ;;  %v418_v53 = vld [vmem:[%s4239_s15 + $0xe8] sm:$0xff]  ;;  %v417_v54 = vld [vmem:[%s4239_s15 + $0xe0] sm:$0xff] }
  0x28   : > { %528 = vmatpush1.msra.mxu0 %v432_v10  ;;  %v420_v55 = vld [vmem:[%s4239_s15 + $0xf8] sm:$0xff]  ;;  %v419_v56 = vld [vmem:[%s4239_s15 + $0xf0] sm:$0xff]  ;;  %v422_v57 = vld [vmem:[%s4239_s15 + $0x108] sm:$0xff] }
  0x29   : > { %529 = vmatprep.subr.mxu0 %v4105_v1  ;;  %v421_v58 = vld [vmem:[%s4239_s15 + $0x100] sm:$0xff]  ;;  %v424_v59 = vld [vmem:[%s4239_s15 + $0x118] sm:$0xff]  ;;  %v423_v60 = vld [vmem:[%s4239_s15 + $0x110] sm:$0xff]  ;;  %s381_s15 = scalar_lea.vmem [#allocation2], %s380_s25 }
  0x2a   : > { %530 = vmatpush1.msra.mxu0 %v431_v11  ;;  %v691_v61 = vld [vmem:[%s5329_s3 + $0x38] sm:$0xff]  ;;  %v690_v62 = vld [vmem:[%s5329_s3 + $0x30] sm:$0xff]  ;;  %v689_v63 = vld [vmem:[%s5329_s3 + $0x28] sm:$0xff]  ;;  %s3280_s14 = sshll.u32 %s381_s15, 4  ;;  %s3281_s14 = int_to_ptr.vmem [resolvable:$true] %s3280_s14 }
  0x2b   : > { %531 = vmatprep.subr.mxu0 %v4105_v1  ;;  %3655 = vmatprep.subr.mxu1 %v691_v61  ;;  %v688_v0 = vld [vmem:[%s5329_s3 + $0x20] sm:$0xff]  ;;  %v687_v2 = vld [vmem:[%s5329_s3 + $0x18] sm:$0xff]  ;;  %s4043_s0 = scalar_lea.vmem %s3281_s14, 16  ;;  %p4050_p0 = scmp.lt.s32.totalorder %s3281_s14, %s4048_s30 }
  0x2c   : > { %532 = vmatpush1.msra.mxu0 %v430_v12  ;;  %3656 = vmatpush3.msra.mxu1 %v691_v61  ;;  %v4391_v5 = vld [vmem:[%s5328_s2] ss:$0 sm:$0xff]  ;;  %p4044_p11 = scmp.ne.s32.totalorder %s3281_s14, %s4043_s0  ;;  %p4051_p1 = scmp.lt.s32.totalorder %s4049_s21, %s4043_s0 }
  0x2d   : > { %533 = vmatprep.subr.mxu0 %v4105_v1  ;;  %3657 = vmatprep.subr.mxu1 %v690_v62 }
  0x2e   : > { %534 = vmatpush1.msra.mxu0 %v429_v13  ;;  %3658 = vmatpush3.msra.mxu1 %v690_v62  ;;  %v702_v62 = vld [vmem:[%s5329_s3 + $0x90] sm:$0xff]  ;;  %p4045_p12 = pnand %p4044_p11, %p4206_p5  ;;  %p4052_p2 = por %p4051_p1, %p4050_p0 }
  0x2f   : > { %535 = vmatprep.subr.mxu0 %v4105_v1  ;;  %3659 = vmatprep.subr.mxu1 %v689_v63 }
  0x30   : > { %536 = vmatpush1.msra.mxu0 %v428_v14  ;;  %3660 = vmatpush3.msra.mxu1 %v689_v63  ;;  %p4046_p13 = pneg %p4045_p12 }
  0x31   : > { %537 = vmatprep.subr.mxu0 %v4105_v1  ;;  %3661 = vmatprep.subr.mxu1 %v688_v0 }
  0x32   : > { %538 = vmatpush1.msra.mxu0 %v427_v15  ;;  %3662 = vmatpush3.msra.mxu1 %v688_v0  ;;  %v701_v0 = vld [vmem:[%s5329_s3 + $0x88] sm:$0xff]  ;;  %p4053_p3 = pnand %p4052_p2, %p4046_p13 }
  0x33   : > { %539 = vmatprep.subr.mxu0 %v4105_v1  ;;  %3666 = vmatprep.subr.mxu1 %v687_v2 }
  0x34   : > { %540 = vmatpush1.msra.mxu0 %v426_v16 }
  0x35   : > { %541 = vmatprep.subr.mxu0 %v4105_v1 }
  0x36   : > { %542 = vmatpush1.msra.mxu0 %v425_v17 }
  0x37   : > { %559 = vmatprep.subr.mxu0 %v4105_v1 }
  0x38   : > { %560 = vmatpush2.msra.mxu0 %v448_v18 }
  0x39   : > { %561 = vmatprep.subr.mxu0 %v4105_v1 }
  0x3a   : > { %562 = vmatpush2.msra.mxu0 %v447_v19 }
  0x3b   : > { %563 = vmatprep.subr.mxu0 %v4105_v1 }
  0x3c   : > { %564 = vmatpush2.msra.mxu0 %v446_v20 }
  0x3d   : > { %565 = vmatprep.subr.mxu0 %v4105_v1 }
  0x3e   : > { %566 = vmatpush2.msra.mxu0 %v445_v21 }
  0x3f   : > { %567 = vmatprep.subr.mxu0 %v4105_v1 }
  0x40   : > { %568 = vmatpush2.msra.mxu0 %v444_v22  ;;  %v686_v22 = vld [vmem:[%s5329_s3 + $0x10] sm:$0xff] }
  0x41   : > { %569 = vmatprep.subr.mxu0 %v4105_v1 }
  0x42   : > { %570 = vmatpush2.msra.mxu0 %v443_v23 }
  0x43   : > { %571 = vmatprep.subr.mxu0 %v4105_v1 }
  0x44   : > { %572 = vmatpush2.msra.mxu0 %v442_v24 }
  0x45   : > { %573 = vmatprep.subr.mxu0 %v4105_v1 }
  0x46   : > { %574 = vmatpush2.msra.mxu0 %v441_v25  ;;  %v685_v25 = vld [vmem:[%s5329_s3 + $0x8] sm:$0xff] }
  0x47   : > { %576 = vmatmul.mubr.f32.vlgmr.msra.gmra.mxu0 %v389_v26  ;;  %3831 = vmatprep.subr.mxu0 %v4105_v1 }
  0x48   : > { %3343 = vmatprep.mubr.msk.f32.mxu0 %vm456_vm0, %v392_v27 }
  0x4b   : > { %581 = vmatmul.mubr.f32.gmra.mxu0 %v391_v28  ;;  %v684_v28 = vld [vmem:[%s5329_s3] sm:$0xff] }
  0x4c   : > { %3344 = vmatprep.mubr.msk.f32.mxu0 %vm456_vm0, %v394_v29 }
  0x4f   : > { %586 = vmatmul.mubr.f32.gmra.mxu0 %v393_v30 }
  0x50   : > { %3345 = vmatprep.mubr.msk.f32.mxu0 %vm456_vm0, %v396_v31  ;;  %v695_v31 = vld [vmem:[%s5329_s3 + $0x58] sm:$0xff] }
  0x53   : > { %591 = vmatmul.mubr.f32.gmra.mxu0 %v395_v32 }
  0x54   : > { %3346 = vmatprep.mubr.msk.f32.mxu0 %vm456_vm0, %v398_v33 }
  0x57   : > { %596 = vmatmul.mubr.f32.gmra.mxu0 %v397_v34 }
  0x58   : > { %3347 = vmatprep.mubr.msk.f32.mxu0 %vm456_vm0, %v400_v35  ;;  %v694_v35 = vld [vmem:[%s5329_s3 + $0x50] sm:$0xff] }
  0x5b   : > { %601 = vmatmul.mubr.f32.gmra.mxu0 %v399_v36 }
  0x5c   : > { %3348 = vmatprep.mubr.msk.f32.mxu0 %vm456_vm0, %v402_v37 }
  0x5f   : > { %606 = vmatmul.mubr.f32.gmra.mxu0 %v401_v38  ;;  %v693_v38 = vld [vmem:[%s5329_s3 + $0x48] sm:$0xff] }
  0x60   : > { %3349 = vmatprep.mubr.msk.f32.mxu0 %vm456_vm0, %v404_v39 }
  0x63   : > { %611 = vmatmul.mubr.f32.gmra.mxu0 %v403_v40 }
  0x64   : > { %3350 = vmatprep.mubr.msk.f32.mxu0 %vm456_vm0, %v406_v41 }
  0x67   : > { %616 = vmatmul.mubr.f32.gmra.mxu0 %v405_v42 }
  0x68   : > { %3351 = vmatprep.mubr.msk.f32.mxu0 %vm456_vm0, %v408_v43  ;;  %v692_v43 = vld [vmem:[%s5329_s3 + $0x40] sm:$0xff] }
  0x6b   : > { %621 = vmatmul.mubr.f32.gmra.mxu0 %v407_v44 }
  0x6c   : > { %3352 = vmatprep.mubr.msk.f32.mxu0 %vm456_vm0, %v410_v45  ;;  %v699_v45 = vld [vmem:[%s5329_s3 + $0x78] sm:$0xff] }
  0x6f   : > { %626 = vmatmul.mubr.f32.gmra.mxu0 %v409_v46 }
  0x70   : > { %3353 = vmatprep.mubr.msk.f32.mxu0 %vm456_vm0, %v412_v47 }
  0x73   : > { %631 = vmatmul.mubr.f32.gmra.mxu0 %v411_v48 }
  0x74   : > { %3354 = vmatprep.mubr.msk.f32.mxu0 %vm456_vm0, %v414_v49  ;;  %v698_v49 = vld [vmem:[%s5329_s3 + $0x70] sm:$0xff] }
  0x77   : > { %636 = vmatmul.mubr.f32.gmra.mxu0 %v413_v50 }
  0x78   : > { %3355 = vmatprep.mubr.msk.f32.mxu0 %vm456_vm0, %v416_v51  ;;  %v697_v51 = vld [vmem:[%s5329_s3 + $0x68] sm:$0xff] }
  0x7b   : > { %641 = vmatmul.mubr.f32.gmra.mxu0 %v415_v52 }
  0x7c   : > { %3356 = vmatprep.mubr.msk.f32.mxu0 %vm456_vm0, %v418_v53 }
  0x7f   : > { %646 = vmatmul.mubr.f32.gmra.mxu0 %v417_v54 }
  0x80   : > { %3357 = vmatprep.mubr.msk.f32.mxu0 %vm456_vm0, %v420_v55 }
  0x83   : > { %651 = vmatmul.mubr.f32.gmra.mxu0 %v419_v56  ;;  %v696_v56 = vld [vmem:[%s5329_s3 + $0x60] sm:$0xff] }
  0x84   : > { %3358 = vmatprep.mubr.msk.f32.mxu0 %vm456_vm0, %v422_v57 }
  0x87   : > { %656 = vmatmul.mubr.f32.gmra.mxu0 %v421_v58  ;;  %v703_v58 = vld [vmem:[%s5329_s3 + $0x98] sm:$0xff] }
  0x88   : > { %3359 = vmatprep.mubr.msk.f32.mxu0 %vm456_vm0, %v424_v59 }
  0x8b   : > { %661 = vmatmul.mubr.f32.gmra.mxu0 %v423_v60 }
  0x8c   : > { %3847 = vmatprep.mubr.msk.f32.mxu0 %vm4106_vm9, %v4105_v1 }
 0x107   : > { %v577_v3 = vpop.f32.mrf.mxu0 }
 0x108   : > { %v578_v14 = vadd.f32 %v4391_v5, %v577_v3 }
 0x109   : > { %v579_v4 = vpop.f32.mrf.mxu0 }
 0x10a   : > { %v666_v21 = vmax.f32 %v578_v14, 0.0 }
 0x10b   : > { %v582_v6 = vpop.f32.mrf.mxu0 }
 0x10c   : > { %v583_v7 = vadd.f32 %v4391_v5, %v582_v6 }
 0x10d   : > { %v584_v8 = vpop.f32.mrf.mxu0 }
 0x10e   : > { %v667_v10 = vmax.f32 %v583_v7, 0.0  ;;  %v700_v7 = vld [vmem:[%s5329_s3 + $0x80] sm:$0xff] }
 0x10f   : > { %v587_v9 = vpop.f32.mrf.mxu0 }
 0x110   : > { %v588_v11 = vadd.f32 %v4391_v5, %v587_v9  ;;  %v751_v16 = vrot.slane %v667_v10, 1  ;;  %v707_v9 = vld [vmem:[%s5329_s3 + $0xb8] sm:$0xff] }
 0x111   : > { %v589_v12 = vpop.f32.mrf.mxu0 }
 0x112   : > { %v668_v13 = vmax.f32 %v588_v11, 0.0 }
 0x113   : > { %v592_v15 = vpop.f32.mrf.mxu0 }
 0x114   : > { %v752_v17 = vrot.slane %v668_v13, 1  ;;  %v593_v18 = vadd.f32 %v4391_v5, %v592_v15  ;;  %v916_v33 = vrot.slane %v668_v13, 2  ;;  %v706_v13 = vld [vmem:[%s5329_s3 + $0xb0] sm:$0xff]  ;;  %v705_v15 = vld [vmem:[%s5329_s3 + $0xa8] sm:$0xff] }
 0x115   : > { %v594_v19 = vpop.f32.mrf.mxu0 }
 0x116   : > { %v753_v20 = vsel %vm750_vm1, %v751_v16, %v752_v17  ;;  %v669_v24 = vmax.f32 %v593_v18, 0.0 }
 0x117   : > { %3663 = vmatprep.mubr.msk.f32.mxu1 %vm754_vm2, %v753_v20  ;;  %v597_v23 = vpop.f32.mrf.mxu0  ;;  %v704_v20 = vld [vmem:[%s5329_s3 + $0xa0] sm:$0xff] }
 0x118   : > { %3664 = vmatmul.mubr.msk.f32.vlgmr.msra.gmra.mxu1 %vm754_vm2, %v752_v17  ;;  %v598_v27 = vadd.f32 %v4391_v5, %v597_v23  ;;  %v917_v30 = vrot.slane %v669_v24, 2  ;;  %v1002_v40 = vrot.slane %v669_v24, 3 }
 0x119   : > { %3667 = vmatpush3.msra.mxu1 %v687_v2  ;;  %3674 = vmatprep.mubr.msk.f32.mxu1 %vm754_vm2, %v666_v21  ;;  %v599_v26 = vpop.f32.mrf.mxu0 }
 0x11a   : > { %3668 = vmatprep.subr.mxu1 %v686_v22  ;;  %v670_v34 = vmax.f32 %v598_v27, 0.0  ;;  %v918_v37 = vsel %vm915_vm3, %v916_v33, %v917_v30  ;;  %v710_v26 = vld [vmem:[%s5329_s3 + $0xd0] sm:$0xff] }
 0x11b   : > { %3669 = vmatpush3.msra.mxu1 %v686_v22  ;;  %v602_v29 = vpop.f32.mrf.mxu0  ;;  %v711_v22 = vld [vmem:[%s5329_s3 + $0xd8] sm:$0xff] }
 0x11c   : > { %3670 = vmatprep.subr.mxu1 %v685_v25  ;;  %v1003_v41 = vrot.slane %v670_v34, 3  ;;  %v603_v42 = vadd.f32 %v4391_v5, %v602_v29  ;;  %v1088_v53 = vrot.slane %v670_v34, 4  ;;  %v715_v34 = vld [vmem:[%s5329_s3 + $0xf8] sm:$0xff] }
 0x11d   : > { %3671 = vmatpush3.msra.mxu1 %v685_v25  ;;  %v604_v32 = vpop.f32.mrf.mxu0 }
 0x11e   : > { %3672 = vmatprep.subr.mxu1 %v684_v28  ;;  %v671_v47 = vmax.f32 %v603_v42, 0.0  ;;  %v1004_v48 = vsel %vm1001_vm4, %v1002_v40, %v1003_v41  ;;  %v708_v32 = vld [vmem:[%s5329_s3 + $0xc0] sm:$0xff]  ;;  %v713_v40 = vld [vmem:[%s5329_s3 + $0xe8] sm:$0xff] }
 0x11f   : > { %3673 = vmatpush3.msra.mxu1 %v684_v28  ;;  %v607_v36 = vpop.f32.mrf.mxu0  ;;  %v709_v28 = vld [vmem:[%s5329_s3 + $0xc8] sm:$0xff] }
 0x120   : > { %3675 = vmatmul.mubr.msk.f32.vlgmr.msra.gmra.mxu1 %vm754_vm2, %v667_v10  ;;  %3677 = vmatprep.subr.mxu1 %v695_v31  ;;  %v1089_v54 = vrot.slane %v671_v47, 4  ;;  %v608_v55 = vadd.f32 %v4391_v5, %v607_v36  ;;  %v1174_v3 = vrot.slane %v671_v47, 5  ;;  %v719_v47 = vld [vmem:[%s5329_s3 + $0x118] sm:$0xff] }
 0x121   : > { %3678 = vmatpush3.msra.mxu1 %v695_v31  ;;  %3685 = vmatprep.mubr.msk.f32.mxu1 %vm754_vm2, %v918_v37  ;;  %v609_v39 = vpop.f32.mrf.mxu0  ;;  %v714_v37 = vld [vmem:[%s5329_s3 + $0xf0] sm:$0xff] }
 0x122   : > { %3679 = vmatprep.subr.mxu1 %v694_v35  ;;  %v672_v60 = vmax.f32 %v608_v55, 0.0  ;;  %v1090_v61 = vsel %vm1087_vm5, %v1088_v53, %v1089_v54 }
 0x123   : > { %3680 = vmatpush3.msra.mxu1 %v694_v35  ;;  %v612_v44 = vpop.f32.mrf.mxu0 }
 0x124   : > { %3681 = vmatprep.subr.mxu1 %v693_v38  ;;  %v1175_v4 = vrot.slane %v672_v60, 5  ;;  %v613_v6 = vadd.f32 %v4391_v5, %v612_v44  ;;  %v1260_v17 = vrot.slane %v672_v60, 6  ;;  %v712_v44 = vld [vmem:[%s5329_s3 + $0xe0] sm:$0xff]  ;;  %v722_v60 = vld [vmem:[%s5329_s3 + $0x130] sm:$0xff] }
 0x125   : > { %3682 = vmatpush3.msra.mxu1 %v693_v38  ;;  %v614_v46 = vpop.f32.mrf.mxu0 }
 0x126   : > { %3683 = vmatprep.subr.mxu1 %v692_v43  ;;  %v673_v11 = vmax.f32 %v613_v6, 0.0  ;;  %v1176_v12 = vsel %vm1173_vm6, %v1174_v3, %v1175_v4  ;;  %v727_v3 = vld [vmem:[%s5329_s3 + $0x158] sm:$0xff] }
 0x127   : > { %3684 = vmatpush3.msra.mxu1 %v692_v43  ;;  %v617_v50 = vpop.f32.mrf.mxu0 }
 0x128   : > { %3686 = vmatmul.mubr.msk.f32.vlgmr.msra.gmra.mxu1 %vm754_vm2, %v917_v30  ;;  %3688 = vmatprep.subr.mxu1 %v699_v45  ;;  %v1261_v18 = vrot.slane %v673_v11, 6  ;;  %v618_v19 = vadd.f32 %v4391_v5, %v617_v50  ;;  %v1346_v30 = vrot.slane %v673_v11, 7 }
 0x129   : > { %3689 = vmatpush3.msra.mxu1 %v699_v45  ;;  %3696 = vmatprep.mubr.msk.f32.mxu1 %vm754_vm2, %v1004_v48  ;;  %v619_v52 = vpop.f32.mrf.mxu0 }
 0x12a   : > { %3690 = vmatprep.subr.mxu1 %v698_v49  ;;  %v674_v24 = vmax.f32 %v618_v19, 0.0  ;;  %v1262_v25 = vsel %vm1259_vm7, %v1260_v17, %v1261_v18  ;;  %v717_v52 = vld [vmem:[%s5329_s3 + $0x108] sm:$0xff] }
 0x12b   : > { %3691 = vmatpush3.msra.mxu1 %v698_v49  ;;  %v4443_v57 = vpop.f32.mrf.mxu0  ;;  %v729_v17 = vld [vmem:[%s5329_s3 + $0x168] sm:$0xff] }
 0x12c   : > { %3692 = vmatprep.subr.mxu1 %v697_v51  ;;  %v1347_v31 = vrot.slane %v674_v24, 7  ;;  %v623_v39 = vadd.f32 %v4391_v5, %v4443_v57  ;;  %v723_v57 = vld [vmem:[%s5329_s3 + $0x138] sm:$0xff] }
 0x12d   : > { %3693 = vmatpush3.msra.mxu1 %v697_v51  ;;  %v624_v59 = vpop.f32.mrf.mxu0  ;;  %v718_v51 = vld [vmem:[%s5329_s3 + $0x110] sm:$0xff] }
 0x12e   : > { %3694 = vmatprep.subr.mxu1 %v696_v56  ;;  %v1348_v36 = vsel %vm1345_vm8, %v1346_v30, %v1347_v31  ;;  %v675_v46 = vmax.f32 %v623_v39, 0.0  ;;  %v732_v30 = vld [vmem:[%s5329_s3 + $0x180] sm:$0xff] }
 0x12f   : > { %3695 = vmatpush3.msra.mxu1 %v696_v56  ;;  %v4452_v63 = vpop.f32.mrf.mxu0  ;;  %v716_v56 = vld [vmem:[%s5329_s3 + $0x100] sm:$0xff] }
 0x130   : > { %3697 = vmatmul.mubr.msk.f32.vlgmr.msra.gmra.mxu1 %vm754_vm2, %v1003_v41  ;;  %3699 = vmatprep.subr.mxu1 %v703_v58  ;;  %v628_v42 = vadd.f32 %v4391_v5, %v4452_v63  ;;  %v736_v39 = vld [vmem:[%s5329_s3 + $0x1a0] sm:$0xff] }
 0x131   : > { %3700 = vmatpush3.msra.mxu1 %v703_v58  ;;  %3707 = vmatprep.mubr.msk.f32.mxu1 %vm754_vm2, %v1090_v61  ;;  %v629_v2 = vpop.f32.mrf.mxu0  ;;  %v721_v61 = vld [vmem:[%s5329_s3 + $0x128] sm:$0xff] }
 0x132   : > { %3701 = vmatprep.subr.mxu1 %v702_v62  ;;  %v676_v49 = vmax.f32 %v628_v42, 0.0  ;;  %v720_v2 = vld [vmem:[%s5329_s3 + $0x120] sm:$0xff] }
 0x133   : > { %3702 = vmatpush3.msra.mxu1 %v702_v62  ;;  %v4463_v8 = vpop.f32.mrf.mxu0 }
 0x134   : > { %3703 = vmatprep.subr.mxu1 %v701_v0  ;;  %v633_v43 = vadd.f32 %v4391_v5, %v4463_v8  ;;  %v1514_v53 = vrot.slane %v676_v49, 1  ;;  %v725_v8 = vld [vmem:[%s5329_s3 + $0x148] sm:$0xff] }
 0x135   : > { %3704 = vmatpush3.msra.mxu1 %v701_v0  ;;  %v634_v10 = vpop.f32.mrf.mxu0 }
 0x136   : > { %3705 = vmatprep.subr.mxu1 %v700_v7  ;;  %v677_v50 = vmax.f32 %v633_v43, 0.0  ;;  %v741_v43 = vld [vmem:[%s5329_s3 + $0x1c8] sm:$0xff] }
 0x137   : > { %3706 = vmatpush3.msra.mxu1 %v700_v7  ;;  %v4472_v14 = vpop.f32.mrf.mxu0  ;;  %v726_v7 = vld [vmem:[%s5329_s3 + $0x150] sm:$0xff] }
 0x138   : > { %3708 = vmatmul.mubr.msk.f32.vlgmr.msra.gmra.mxu1 %vm754_vm2, %v1089_v54  ;;  %3710 = vmatprep.subr.mxu1 %v707_v9  ;;  %v1515_v54 = vrot.slane %v677_v50, 1  ;;  %v638_v55 = vadd.f32 %v4391_v5, %v4472_v14  ;;  %v1599_v62 = vrot.slane %v677_v50, 2  ;;  %v745_v50 = vld [vmem:[%s5329_s3 + $0x1e8] sm:$0xff] }
 0x139   : > { %3711 = vmatpush3.msra.mxu1 %v707_v9  ;;  %3718 = vmatprep.mubr.msk.f32.mxu1 %vm754_vm2, %v1176_v12  ;;  %v639_v16 = vpop.f32.mrf.mxu0  ;;  %v724_v12 = vld [vmem:[%s5329_s3 + $0x140] sm:$0xff] }
 0x13a   : > { %3712 = vmatprep.subr.mxu1 %v706_v13  ;;  %v678_v58 = vmax.f32 %v638_v55, 0.0  ;;  %v1516_v59 = vsel %vm750_vm1, %v1514_v53, %v1515_v54  ;;  %v730_v16 = vld [vmem:[%s5329_s3 + $0x170] sm:$0xff]  ;;  %v2131_v55 = vld [vmem:[%s5331_s5 + $0x60] sm:$0xff] }
 0x13b   : > { %3713 = vmatpush3.msra.mxu1 %v706_v13  ;;  %v4483_v21 = vpop.f32.mrf.mxu0  ;;  %v731_v13 = vld [vmem:[%s5329_s3 + $0x178] sm:$0xff]  ;;  %v2133_v53 = vld [vmem:[%s5331_s5 + $0x70] sm:$0xff] }
 0x13c   : > { %3714 = vmatprep.subr.mxu1 %v705_v15  ;;  %v1600_v63 = vrot.slane %v678_v58, 2  ;;  %v643_v0 = vadd.f32 %v4391_v5, %v4483_v21  ;;  %v1684_v9 = vrot.slane %v678_v58, 3  ;;  %v728_v21 = vld [vmem:[%s5329_s3 + $0x160] sm:$0xff]  ;;  %v2126_v58 = vld [vmem:[%s5331_s5 + $0x38] sm:$0xff] }
 0x13d   : > { %3715 = vmatpush3.msra.mxu1 %v705_v15  ;;  %v644_v23 = vpop.f32.mrf.mxu0 }
 0x13e   : > { %3716 = vmatprep.subr.mxu1 %v704_v20  ;;  %v1601_v6 = vsel %vm915_vm3, %v1599_v62, %v1600_v63  ;;  %v2123_v62 = vld [vmem:[%s5331_s5 + $0x20] sm:$0xff] }
 0x13f   : > { %3717 = vmatpush3.msra.mxu1 %v704_v20  ;;  %v4492_v27 = vpop.f32.mrf.mxu0 }
 0x140   : > { %3719 = vmatmul.mubr.msk.f32.vlgmr.msra.gmra.mxu1 %vm754_vm2, %v1175_v4  ;;  %3721 = vmatprep.subr.mxu1 %v711_v22  ;;  %v679_v4 = vmax.f32 %v643_v0, 0.0  ;;  %v648_v11 = vadd.f32 %v4391_v5, %v4492_v27  ;;  %v2121_v0 = vld [vmem:[%s5331_s5 + $0x10] sm:$0xff] }
 0x141   : > { %3722 = vmatpush3.msra.mxu1 %v711_v22  ;;  %3729 = vmatprep.mubr.msk.f32.mxu1 %vm754_vm2, %v1262_v25  ;;  %v649_v29 = vpop.f32.mrf.mxu0  ;;  %v735_v22 = vld [vmem:[%s5329_s3 + $0x198] sm:$0xff]  ;;  %v734_v25 = vld [vmem:[%s5329_s3 + $0x190] sm:$0xff] }
 0x142   : > { %3723 = vmatprep.subr.mxu1 %v710_v26  ;;  %v1685_v10 = vrot.slane %v679_v4, 3  ;;  %v680_v14 = vmax.f32 %v648_v11, 0.0 }
 0x143   : > { %3724 = vmatpush3.msra.mxu1 %v710_v26  ;;  %v4502_v33 = vpop.f32.mrf.mxu0  ;;  %v733_v26 = vld [vmem:[%s5329_s3 + $0x188] sm:$0xff] }
 0x144   : > { %3725 = vmatprep.subr.mxu1 %v709_v28  ;;  %v1686_v15 = vsel %vm1001_vm4, %v1684_v9, %v1685_v10  ;;  %v1770_v19 = vrot.slane %v680_v14, 4  ;;  %v653_v20 = vadd.f32 %v4391_v5, %v4502_v33  ;;  %v1854_v27 = vrot.slane %v680_v14, 5 }
 0x145   : > { %3726 = vmatpush3.msra.mxu1 %v709_v28  ;;  %v654_v35 = vpop.f32.mrf.mxu0 }
 0x146   : > { %3727 = vmatprep.subr.mxu1 %v708_v32  ;;  %v681_v23 = vmax.f32 %v653_v20, 0.0  ;;  %v737_v35 = vld [vmem:[%s5329_s3 + $0x1a8] sm:$0xff] }
 0x147   : > { %3728 = vmatpush3.msra.mxu1 %v708_v32  ;;  %v4511_v38 = vpop.f32.mrf.mxu0 }
 0x148   : > { %3730 = vmatmul.mubr.msk.f32.vlgmr.msra.gmra.mxu1 %vm754_vm2, %v1261_v18  ;;  %3732 = vmatprep.subr.mxu1 %v715_v34  ;;  %v1769_v18 = vrot.slane %v679_v4, 4  ;;  %v1855_v28 = vrot.slane %v681_v23, 5  ;;  %v658_v29 = vadd.f32 %v4391_v5, %v4511_v38  ;;  %v2127_v4 = vld [vmem:[%s5331_s5 + $0x40] sm:$0xff] }
 0x149   : > { %3733 = vmatpush3.msra.mxu1 %v715_v34  ;;  %3740 = vmatprep.mubr.msk.f32.mxu1 %vm754_vm2, %v1348_v36  ;;  %v659_v41 = vpop.f32.mrf.mxu0  ;;  %v738_v34 = vld [vmem:[%s5329_s3 + $0x1b0] sm:$0xff]  ;;  %v1939_v36 = vrot.slane %v681_v23, 6 }
 0x14a   : > { %3734 = vmatprep.subr.mxu1 %v714_v37  ;;  %v1771_v24 = vsel %vm1087_vm5, %v1769_v18, %v1770_v19  ;;  %v682_v32 = vmax.f32 %v658_v29, 0.0  ;;  %v1856_v33 = vsel %vm1173_vm6, %v1854_v27, %v1855_v28 }
 0x14b   : > { %3735 = vmatpush3.msra.mxu1 %v714_v37  ;;  %v4527_v45 = vpop.f32.mrf.mxu0 }
 0x14c   : > { %3736 = vmatprep.subr.mxu1 %v713_v40  ;;  %v1940_v37 = vrot.slane %v682_v32, 6  ;;  %v663_v38 = vadd.f32 %v4391_v5, %v4527_v45  ;;  %v742_v5 = vld [vmem:[%s5329_s3 + $0x1d0] sm:$0xff] }
 0x14d   : > { %3737 = vmatpush3.msra.mxu1 %v713_v40  ;;  %v664_v48 = vpop.f32.mrf.mxu0  ;;  %v743_v40 = vld [vmem:[%s5329_s3 + $0x1d8] sm:$0xff] }
 0x14e   : > { %3738 = vmatprep.subr.mxu1 %v712_v44  ;;  %v683_v41 = vmax.f32 %v663_v38, 0.0  ;;  %v1941_v42 = vsel %vm1259_vm7, %v1939_v36, %v1940_v37 }
 0x14f   : > { %3739 = vmatpush3.msra.mxu1 %v712_v44  ;;  %v2024_v44 = vrot.slane %v682_v32, 7 }
 0x150   : > { %3741 = vmatmul.mubr.msk.f32.vlgmr.msra.gmra.mxu1 %vm754_vm2, %v1347_v31  ;;  %3743 = vmatprep.subr.mxu1 %v719_v47  ;;  %v739_v31 = vld [vmem:[%s5329_s3 + $0x1b8] sm:$0xff]  ;;  %v2025_v45 = vrot.slane %v683_v41, 7 }
 0x151   : > { %3744 = vmatpush3.msra.mxu1 %v719_v47  ;;  %3751 = vmatprep.mubr.msk.f32.mxu1 %vm754_vm2, %v675_v46  ;;  %v740_v46 = vld [vmem:[%s5329_s3 + $0x1c0] sm:$0xff]  ;;  %v747_v47 = vld [vmem:[%s5329_s3 + $0x1f8] sm:$0xff] }
 0x152   : > { %3745 = vmatprep.subr.mxu1 %v718_v51  ;;  %v2026_v48 = vsel %vm1345_vm8, %v2024_v44, %v2025_v45 }
 0x153   : > { %3746 = vmatpush3.msra.mxu1 %v718_v51  ;;  %v744_v51 = vld [vmem:[%s5329_s3 + $0x1e0] sm:$0xff] }
 0x154   : > { %3747 = vmatprep.subr.mxu1 %v717_v52 }
 0x155   : > { %3748 = vmatpush3.msra.mxu1 %v717_v52  ;;  %v2134_v52 = vld [vmem:[%s5331_s5 + $0x78] sm:$0xff] }
 0x156   : > { %3749 = vmatprep.subr.mxu1 %v716_v56  ;;  %3832 = vmatpush3.msra.mxu0 %v2134_v52 }
 0x157   : > { %3750 = vmatpush3.msra.mxu1 %v716_v56  ;;  %3833 = vmatprep.subr.mxu0 %v4105_v1  ;;  %v2130_v56 = vld [vmem:[%s5331_s5 + $0x58] sm:$0xff] }
 0x158   : > { %3752 = vmatmul.mubr.msk.f32.vlgmr.msra.gmra.mxu1 %vm754_vm2, %v676_v49  ;;  %3754 = vmatprep.subr.mxu1 %v723_v57  ;;  %v746_v49 = vld [vmem:[%s5329_s3 + $0x1f0] sm:$0xff] }
 0x159   : > { %3755 = vmatpush3.msra.mxu1 %v723_v57  ;;  %3762 = vmatprep.mubr.msk.f32.mxu1 %vm754_vm2, %v1516_v59  ;;  %v2129_v57 = vld [vmem:[%s5331_s5 + $0x50] sm:$0xff]  ;;  %v2128_v59 = vld [vmem:[%s5331_s5 + $0x48] sm:$0xff] }
 0x15a   : > { %3756 = vmatprep.subr.mxu1 %v722_v60  ;;  %3834 = vmatpush3.msra.mxu0 %v2133_v53 }
 0x15b   : > { %3757 = vmatpush3.msra.mxu1 %v722_v60  ;;  %3835 = vmatprep.subr.mxu0 %v4105_v1  ;;  %v2125_v60 = vld [vmem:[%s5331_s5 + $0x30] sm:$0xff] }
 0x15c   : > { %3758 = vmatprep.subr.mxu1 %v721_v61 }
 0x15d   : > { %3759 = vmatpush3.msra.mxu1 %v721_v61  ;;  %v2124_v61 = vld [vmem:[%s5331_s5 + $0x28] sm:$0xff] }
 0x15e   : > { %3760 = vmatprep.subr.mxu1 %v720_v2 }
 0x15f   : > { %3761 = vmatpush3.msra.mxu1 %v720_v2  ;;  %v2120_v2 = vld [vmem:[%s5331_s5 + $0x8] sm:$0xff] }
 0x160   : > { %3763 = vmatmul.mubr.msk.f32.vlgmr.msra.gmra.mxu1 %vm754_vm2, %v1515_v54  ;;  %3765 = vmatprep.subr.mxu1 %v727_v3  ;;  %v2132_v54 = vld [vmem:[%s5331_s5 + $0x68] sm:$0xff] }
 0x161   : > { %3766 = vmatpush3.msra.mxu1 %v727_v3  ;;  %3773 = vmatprep.mubr.msk.f32.mxu1 %vm754_vm2, %v1601_v6  ;;  %v2119_v3 = vld [vmem:[%s5331_s5] sm:$0xff] }
 0x162   : > { %3767 = vmatprep.subr.mxu1 %v726_v7  ;;  %3836 = vmatpush3.msra.mxu0 %v2132_v54 }
 0x163   : > { %3768 = vmatpush3.msra.mxu1 %v726_v7  ;;  %3837 = vmatprep.subr.mxu0 %v4105_v1 }
 0x164   : > { %3769 = vmatprep.subr.mxu1 %v725_v8  ;;  %3838 = vmatpush3.msra.mxu0 %v2131_v55 }
 0x165   : > { %3770 = vmatpush3.msra.mxu1 %v725_v8  ;;  %3839 = vmatprep.subr.mxu0 %v4105_v1 }
 0x166   : > { %3771 = vmatprep.subr.mxu1 %v724_v12  ;;  %3840 = vmatpush3.msra.mxu0 %v2130_v56 }
 0x167   : > { %3772 = vmatpush3.msra.mxu1 %v724_v12  ;;  %3841 = vmatprep.subr.mxu0 %v4105_v1 }
 0x168   : > { %3774 = vmatmul.mubr.msk.f32.vlgmr.msra.gmra.mxu1 %vm754_vm2, %v1600_v63  ;;  %3776 = vmatprep.subr.mxu1 %v731_v13  ;;  %v2122_v63 = vld [vmem:[%s5331_s5 + $0x18] sm:$0xff] }
 0x169   : > { %3777 = vmatpush3.msra.mxu1 %v731_v13  ;;  %3784 = vmatprep.mubr.msk.f32.mxu1 %vm754_vm2, %v1686_v15 }
 0x16a   : > { %3778 = vmatprep.subr.mxu1 %v730_v16  ;;  %3842 = vmatpush3.msra.mxu0 %v2129_v57 }
 0x16b   : > { %3779 = vmatpush3.msra.mxu1 %v730_v16  ;;  %3843 = vmatprep.subr.mxu0 %v4105_v1 }
 0x16c   : > { %3780 = vmatprep.subr.mxu1 %v729_v17  ;;  %3844 = vmatpush3.msra.mxu0 %v2128_v59 }
 0x16d   : > { %3781 = vmatpush3.msra.mxu1 %v729_v17  ;;  %3845 = vmatprep.subr.mxu0 %v4105_v1 }
 0x16e   : > { %3782 = vmatprep.subr.mxu1 %v728_v21  ;;  %3846 = vmatpush3.msra.mxu0 %v2127_v4 }
 0x16f   : > { %3783 = vmatpush3.msra.mxu1 %v728_v21  ;;  %3869 = vmatprep.subr.mxu0 %v4105_v1 }
 0x170   : > { %3785 = vmatmul.mubr.msk.f32.vlgmr.msra.gmra.mxu1 %vm754_vm2, %v1685_v10  ;;  %3787 = vmatprep.subr.mxu1 %v735_v22 }
 0x171   : > { %3788 = vmatpush3.msra.mxu1 %v735_v22  ;;  %3795 = vmatprep.mubr.msk.f32.mxu1 %vm754_vm2, %v1771_v24 }
 0x172   : > { %3789 = vmatprep.subr.mxu1 %v734_v25 }
 0x173   : > { %3790 = vmatpush3.msra.mxu1 %v734_v25 }
 0x174   : > { %3791 = vmatprep.subr.mxu1 %v733_v26 }
 0x175   : > { %3792 = vmatpush3.msra.mxu1 %v733_v26 }
 0x176   : > { %3793 = vmatprep.subr.mxu1 %v732_v30 }
 0x177   : > { %3794 = vmatpush3.msra.mxu1 %v732_v30 }
 0x178   : > { %3796 = vmatmul.mubr.msk.f32.vlgmr.msra.gmra.mxu1 %vm754_vm2, %v1770_v19  ;;  %3798 = vmatprep.subr.mxu1 %v739_v31 }
 0x179   : > { %3799 = vmatpush3.msra.mxu1 %v739_v31  ;;  %3806 = vmatprep.mubr.msk.f32.mxu1 %vm754_vm2, %v1856_v33 }
 0x17a   : > { %3800 = vmatprep.subr.mxu1 %v738_v34 }
 0x17b   : > { %3801 = vmatpush3.msra.mxu1 %v738_v34 }
 0x17c   : > { %3802 = vmatprep.subr.mxu1 %v737_v35 }
 0x17d   : > { %3803 = vmatpush3.msra.mxu1 %v737_v35 }
 0x17e   : > { %3804 = vmatprep.subr.mxu1 %v736_v39 }
 0x17f   : > { %3805 = vmatpush3.msra.mxu1 %v736_v39 }
 0x180   : > { %3807 = vmatmul.mubr.msk.f32.vlgmr.msra.gmra.mxu1 %vm754_vm2, %v1855_v28  ;;  %3809 = vmatprep.subr.mxu1 %v743_v40 }
 0x181   : > { %3810 = vmatpush3.msra.mxu1 %v743_v40  ;;  %3817 = vmatprep.mubr.msk.f32.mxu1 %vm754_vm2, %v1941_v42 }
 0x182   : > { %3811 = vmatprep.subr.mxu1 %v742_v5 }
 0x183   : > { %3812 = vmatpush3.msra.mxu1 %v742_v5 }
 0x184   : > { %3813 = vmatprep.subr.mxu1 %v741_v43 }
 0x185   : > { %3814 = vmatpush3.msra.mxu1 %v741_v43 }
 0x186   : > { %3815 = vmatprep.subr.mxu1 %v740_v46 }
 0x187   : > { %3816 = vmatpush3.msra.mxu1 %v740_v46 }
 0x188   : > { %3818 = vmatmul.mubr.msk.f32.vlgmr.msra.gmra.mxu1 %vm754_vm2, %v1940_v37  ;;  %3820 = vmatprep.subr.mxu1 %v747_v47 }
 0x189   : > { %3821 = vmatpush3.msra.mxu1 %v747_v47  ;;  %3828 = vmatprep.mubr.msk.f32.mxu1 %vm754_vm2, %v2026_v48 }
 0x18a   : > { %3822 = vmatprep.subr.mxu1 %v746_v49 }
 0x18b   : > { %3823 = vmatpush3.msra.mxu1 %v746_v49 }
 0x18c   : > { %3824 = vmatprep.subr.mxu1 %v745_v50 }
 0x18d   : > { %3825 = vmatpush3.msra.mxu1 %v745_v50 }
 0x18e   : > { %3826 = vmatprep.subr.mxu1 %v744_v51 }
 0x18f   : > { %3827 = vmatpush3.msra.mxu1 %v744_v51 }
 0x190   : > { %3829 = vmatmul.mubr.msk.f32.vlgmr.msra.gmra.mxu1 %vm754_vm2, %v2025_v45  ;;  %3850 = vmatprep.subr.mxu1 %v4105_v1 }
 0x191   : > { %3851 = vmatpush3.msra.mxu1 %v2126_v58  ;;  %3866 = vmatprep.mubr.msk.f32.mxu1 %vm4106_vm9, %v4105_v1 }
 0x192   : > { %3852 = vmatprep.subr.mxu1 %v4105_v1 }
 0x193   : > { %3853 = vmatpush3.msra.mxu1 %v2125_v60 }
 0x194   : > { %3854 = vmatprep.subr.mxu1 %v4105_v1 }
 0x195   : > { %3855 = vmatpush3.msra.mxu1 %v2124_v61 }
 0x196   : > { %3856 = vmatprep.subr.mxu1 %v4105_v1 }
 0x197   : > { %3857 = vmatpush3.msra.mxu1 %v2123_v62 }
 0x198   : > { %3858 = vmatprep.subr.mxu1 %v4105_v1 }
 0x199   : > { %3859 = vmatpush3.msra.mxu1 %v2122_v63  ;;  %v3392_v63 = vld [vmem:[%s5330_s4] ss:$0 sm:$0xff] }
 0x19a   : > { %3860 = vmatprep.subr.mxu1 %v4105_v1 }
 0x19b   : > { %3861 = vmatpush3.msra.mxu1 %v2121_v0 }
 0x19c   : > { %3862 = vmatprep.subr.mxu1 %v4105_v1 }
 0x19d   : > { %3863 = vmatpush3.msra.mxu1 %v2120_v2 }
 0x19e   : > { %3864 = vmatprep.subr.mxu1 %v4105_v1 }
 0x19f   : > { %3865 = vmatpush3.msra.mxu1 %v2119_v3 }
 0x1a0   : > { %3888 = vmatprep.subr.mxu1 %v4105_v1 }
 0x1d8   : > { %v3665_v6 = vpop.f32.mrf.mxu1 }
 0x1da   : > { %v825_v7 = vpop.f32.mrf.mxu1 }
 0x1e0   : > { %v3676_v8 = vpop.f32.mrf.mxu1 }
 0x1e1   : > { %v911_v9 = vadd.f32 %v3676_v8, %v3665_v6 }
 0x1e2   : > { %v905_v10 = vpop.f32.mrf.mxu1 }
 0x1e3   : > { %v906_v41 = vadd.f32 %v905_v10, %v825_v7 }
 0x1e8   : > { %v3687_v11 = vpop.f32.mrf.mxu1 }
 0x1e9   : > { %v999_v12 = vadd.f32 %v3687_v11, %v911_v9  ;;  %v2150_v9 = vld [vmem:[%s5331_s5 + $0xf8] sm:$0xff] }
 0x1ea   : > { %v989_v13 = vpop.f32.mrf.mxu1  ;;  %v2142_v11 = vld [vmem:[%s5331_s5 + $0xb8] sm:$0xff] }
 0x1eb   : > { %v998_v5 = vadd.f32 %v989_v13, %v906_v41  ;;  %v2141_v13 = vld [vmem:[%s5331_s5 + $0xb0] sm:$0xff]  ;;  %v2152_v41 = vld [vmem:[%s5331_s5 + $0x108] sm:$0xff] }
 0x1f0   : > { %v3698_v14 = vpop.f32.mrf.mxu1 }
 0x1f1   : > { %v1085_v15 = vadd.f32 %v3698_v14, %v999_v12  ;;  %v2149_v12 = vld [vmem:[%s5331_s5 + $0xf0] sm:$0xff]  ;;  %v2148_v14 = vld [vmem:[%s5331_s5 + $0xe8] sm:$0xff] }
 0x1f2   : > { %v1075_v16 = vpop.f32.mrf.mxu1 }
 0x1f3   : > { %v1084_v44 = vadd.f32 %v1075_v16, %v998_v5  ;;  %v2147_v16 = vld [vmem:[%s5331_s5 + $0xe0] sm:$0xff] }
 0x1f8   : > { %v3709_v17 = vpop.f32.mrf.mxu1 }
 0x1f9   : > { %v1171_v18 = vadd.f32 %v3709_v17, %v1085_v15  ;;  %v2140_v15 = vld [vmem:[%s5331_s5 + $0xa8] sm:$0xff]  ;;  %v2139_v17 = vld [vmem:[%s5331_s5 + $0xa0] sm:$0xff] }
 0x1fa   : > { %v1161_v19 = vpop.f32.mrf.mxu1 }
 0x1fb   : > { %v1170_v45 = vadd.f32 %v1161_v19, %v1084_v44  ;;  %v2138_v19 = vld [vmem:[%s5331_s5 + $0x98] sm:$0xff] }
 0x1fc   : > { %v2182_v44 = vld [vmem:[%s5331_s5 + $0x1f8] sm:$0xff] }
 0x200   : > { %v3720_v20 = vpop.f32.mrf.mxu1 }
 0x201   : > { %v1257_v21 = vadd.f32 %v3720_v20, %v1171_v18  ;;  %v2146_v18 = vld [vmem:[%s5331_s5 + $0xd8] sm:$0xff]  ;;  %v2145_v20 = vld [vmem:[%s5331_s5 + $0xd0] sm:$0xff] }
 0x202   : > { %v1247_v22 = vpop.f32.mrf.mxu1 }
 0x203   : > { %v1256_v47 = vadd.f32 %v1247_v22, %v1170_v45  ;;  %v2144_v22 = vld [vmem:[%s5331_s5 + $0xc8] sm:$0xff] }
 0x208   : > { %v3731_v23 = vpop.f32.mrf.mxu1 }
 0x209   : > { %v1343_v24 = vadd.f32 %v3731_v23, %v1257_v21  ;;  %v2137_v21 = vld [vmem:[%s5331_s5 + $0x90] sm:$0xff]  ;;  %v2136_v23 = vld [vmem:[%s5331_s5 + $0x88] sm:$0xff] }
 0x20a   : > { %v1333_v25 = vpop.f32.mrf.mxu1 }
 0x20b   : > { %v1342_v49 = vadd.f32 %v1333_v25, %v1256_v47  ;;  %v2181_v47 = vld [vmem:[%s5331_s5 + $0x1f0] sm:$0xff] }
 0x210   : > { %v3742_v26 = vpop.f32.mrf.mxu1 }
 0x211   : > { %v1429_v27 = vadd.f32 %v3742_v26, %v1343_v24  ;;  %v2143_v24 = vld [vmem:[%s5331_s5 + $0xc0] sm:$0xff] }
 0x212   : > { %v1419_v28 = vpop.f32.mrf.mxu1  ;;  %v2135_v26 = vld [vmem:[%s5331_s5 + $0x80] sm:$0xff] }
 0x213   : > { %v1428_v51 = vadd.f32 %v1419_v28, %v1342_v49  ;;  %v2180_v49 = vld [vmem:[%s5331_s5 + $0x1e8] sm:$0xff] }
 0x218   : > { %v3753_v29 = vpop.f32.mrf.mxu1 }
 0x219   : > { %v1512_v30 = vadd.f32 %v3753_v29, %v1429_v27  ;;  %v2166_v27 = vld [vmem:[%s5331_s5 + $0x178] sm:$0xff] }
 0x21a   : > { %v1502_v31 = vpop.f32.mrf.mxu1  ;;  %v2158_v29 = vld [vmem:[%s5331_s5 + $0x138] sm:$0xff] }
 0x21b   : > { %v1511_v52 = vadd.f32 %v1502_v31, %v1428_v51  ;;  %v2157_v31 = vld [vmem:[%s5331_s5 + $0x130] sm:$0xff]  ;;  %v2179_v51 = vld [vmem:[%s5331_s5 + $0x1e0] sm:$0xff] }
 0x220   : > { %v3764_v32 = vpop.f32.mrf.mxu1 }
 0x221   : > { %v1597_v33 = vadd.f32 %v3764_v32, %v1512_v30  ;;  %v2165_v30 = vld [vmem:[%s5331_s5 + $0x170] sm:$0xff]  ;;  %v2164_v32 = vld [vmem:[%s5331_s5 + $0x168] sm:$0xff] }
 0x222   : > { %v1587_v34 = vpop.f32.mrf.mxu1 }
 0x223   : > { %v1596_v54 = vadd.f32 %v1587_v34, %v1511_v52  ;;  %v2163_v34 = vld [vmem:[%s5331_s5 + $0x160] sm:$0xff] }
 0x224   : > { %v2171_v52 = vld [vmem:[%s5331_s5 + $0x1a0] sm:$0xff] }
 0x228   : > { %v3775_v35 = vpop.f32.mrf.mxu1 }
 0x229   : > { %v1682_v36 = vadd.f32 %v3775_v35, %v1597_v33  ;;  %v2156_v33 = vld [vmem:[%s5331_s5 + $0x128] sm:$0xff]  ;;  %v2155_v35 = vld [vmem:[%s5331_s5 + $0x120] sm:$0xff] }
 0x22a   : > { %v1672_v37 = vpop.f32.mrf.mxu1 }
 0x22b   : > { %v1681_v56 = vadd.f32 %v1672_v37, %v1596_v54  ;;  %v2154_v37 = vld [vmem:[%s5331_s5 + $0x118] sm:$0xff] }
 0x22c   : > { %v2170_v54 = vld [vmem:[%s5331_s5 + $0x198] sm:$0xff] }
 0x230   : > { %v3786_v38 = vpop.f32.mrf.mxu1 }
 0x231   : > { %v1767_v39 = vadd.f32 %v3786_v38, %v1682_v36  ;;  %v2162_v36 = vld [vmem:[%s5331_s5 + $0x158] sm:$0xff]  ;;  %v2161_v38 = vld [vmem:[%s5331_s5 + $0x150] sm:$0xff] }
 0x232   : > { %v1757_v40 = vpop.f32.mrf.mxu1 }
 0x233   : > { %v1766_v58 = vadd.f32 %v1757_v40, %v1681_v56  ;;  %v2160_v40 = vld [vmem:[%s5331_s5 + $0x148] sm:$0xff]  ;;  %v2169_v56 = vld [vmem:[%s5331_s5 + $0x190] sm:$0xff] }
 0x238   : > { %v3797_v42 = vpop.f32.mrf.mxu1 }
 0x239   : > { %v1852_v43 = vadd.f32 %v3797_v42, %v1767_v39  ;;  %v2153_v39 = vld [vmem:[%s5331_s5 + $0x110] sm:$0xff]  ;;  %v2159_v42 = vld [vmem:[%s5331_s5 + $0x140] sm:$0xff] }
 0x23a   : > { %v1842_v46 = vpop.f32.mrf.mxu1 }
 0x23b   : > { %v1851_v59 = vadd.f32 %v1842_v46, %v1766_v58  ;;  %v2174_v46 = vld [vmem:[%s5331_s5 + $0x1b8] sm:$0xff]  ;;  %v2168_v58 = vld [vmem:[%s5331_s5 + $0x188] sm:$0xff] }
 0x240   : > { %v3808_v48 = vpop.f32.mrf.mxu1 }
 0x241   : > { %v1937_v50 = vadd.f32 %v3808_v48, %v1852_v43  ;;  %v2151_v43 = vld [vmem:[%s5331_s5 + $0x100] sm:$0xff]  ;;  %v2173_v48 = vld [vmem:[%s5331_s5 + $0x1b0] sm:$0xff] }
 0x242   : > { %v1927_v53 = vpop.f32.mrf.mxu1 }
 0x243   : > { %v1936_v61 = vadd.f32 %v1927_v53, %v1851_v59  ;;  %v2178_v53 = vld [vmem:[%s5331_s5 + $0x1d8] sm:$0xff]  ;;  %v2175_v59 = vld [vmem:[%s5331_s5 + $0x1c0] sm:$0xff] }
 0x248   : > { %v3819_v55 = vpop.f32.mrf.mxu1 }
 0x249   : > { %v2022_v57 = vadd.f32 %v3819_v55, %v1937_v50  ;;  %v2172_v50 = vld [vmem:[%s5331_s5 + $0x1a8] sm:$0xff]  ;;  %v2177_v55 = vld [vmem:[%s5331_s5 + $0x1d0] sm:$0xff] }
 0x24a   : > { %v2012_v60 = vpop.f32.mrf.mxu1 }
 0x24b   : > { %v2021_v0 = vadd.f32 %v2012_v60, %v1936_v61  ;;  %v2167_v61 = vld [vmem:[%s5331_s5 + $0x180] sm:$0xff] }
 0x250   : > { %v3830_v62 = vpop.f32.mrf.mxu1 }
 0x251   : > { %v2107_v2 = vadd.f32 %v3830_v62, %v2022_v57  ;;  %v2176_v57 = vld [vmem:[%s5331_s5 + $0x1c8] sm:$0xff] }
 0x252   : > { %v2097_v3 = vpop.f32.mrf.mxu1 }
 0x253   : > { %v4733_v4 = vadd.f32 %v3392_v63, %v2107_v2  ;;  %v2106_v6 = vadd.f32 %v2097_v3, %v2021_v0  ;;  %v2189_v0 = vld [vmem:[%s5331_s5 + $0x230] sm:$0xff]  ;;  %v2188_v2 = vld [vmem:[%s5331_s5 + $0x228] sm:$0xff]  ;;  %v2187_v3 = vld [vmem:[%s5331_s5 + $0x220] sm:$0xff] }
 0x255   : > { %v2115_v7 = vadd.f32 %v3392_v63, %v2106_v6  ;;  %v2190_v63 = vld [vmem:[%s5331_s5 + $0x238] sm:$0xff] }
 0x256   : > { %v2186_v6 = vld [vmem:[%s5331_s5 + $0x218] sm:$0xff] }
 0x257   : > { %v4735_v8 = vmax.f32 %v2115_v7, 0.0  ;;  %v2185_v7 = vld [vmem:[%s5331_s5 + $0x210] sm:$0xff] }
 0x259   : > { %3867 = vmatmul.mubr.msk.f32.vlgmr.msra.gmra.mxu1 %vm456_vm0, %v4735_v8  ;;  %v2224_v10 = vrot.slane %v4735_v8, 1  ;;  %v2443_v25 = vrot.slane %v4735_v8, 3  ;;  %v2369_v28 = vrot.slane %v4735_v8, 2  ;;  %v2591_v5 = vrot.slane %v4735_v8, 5 }
 0x25a   : > { %3889 = vmatpush3.msra.mxu1 %v2150_v9  ;;  %3904 = vmatprep.mubr.msk.f32.mxu1 %vm4106_vm9, %v4105_v1  ;;  %v2517_v45 = vrot.slane %v4735_v8, 4  ;;  %v2739_v60 = vrot.slane %v4735_v8, 7  ;;  %v2665_v62 = vrot.slane %v4735_v8, 6  ;;  %v2184_v8 = vld [vmem:[%s5331_s5 + $0x208] sm:$0xff]  ;;  %v2183_v9 = vld [vmem:[%s5331_s5 + $0x200] sm:$0xff] }
 0x25b   : > { %3890 = vmatprep.subr.mxu1 %v4105_v1  ;;  %3848 = vmatmul.mubr.msk.f32.vlgmr.msra.gmra.mxu0 %vm456_vm0, %v2224_v10  ;;  %v2118_v10 = vmax.f32 %v4733_v4, 0.0  ;;  %v2221_v4 = vld [vmem:[%s5333_s7 + $0xf0] sm:$0xff] }
 0x25c   : > { %3870 = vmatpush3.msra.mxu0 %v2142_v11  ;;  %3891 = vmatpush3.msra.mxu1 %v2149_v12  ;;  %v2220_v11 = vld [vmem:[%s5333_s7 + $0xe8] sm:$0xff]  ;;  %v2222_v12 = vld [vmem:[%s5333_s7 + $0xf8] sm:$0xff] }
 0x25d   : > { %3871 = vmatprep.subr.mxu0 %v4105_v1  ;;  %3892 = vmatprep.subr.mxu1 %v4105_v1 }
 0x25e   : > { %3872 = vmatpush3.msra.mxu0 %v2141_v13  ;;  %3893 = vmatpush3.msra.mxu1 %v2148_v14  ;;  %v2219_v13 = vld [vmem:[%s5333_s7 + $0xe0] sm:$0xff]  ;;  %v2218_v14 = vld [vmem:[%s5333_s7 + $0xd8] sm:$0xff] }
 0x25f   : > { %3873 = vmatprep.subr.mxu0 %v4105_v1  ;;  %3894 = vmatprep.subr.mxu1 %v4105_v1 }
 0x260   : > { %3874 = vmatpush3.msra.mxu0 %v2140_v15  ;;  %3895 = vmatpush3.msra.mxu1 %v2147_v16  ;;  %v2215_v15 = vld [vmem:[%s5333_s7 + $0xc0] sm:$0xff]  ;;  %v2217_v16 = vld [vmem:[%s5333_s7 + $0xd0] sm:$0xff] }
 0x261   : > { %3875 = vmatprep.subr.mxu0 %v4105_v1  ;;  %3896 = vmatprep.subr.mxu1 %v4105_v1 }
 0x262   : > { %3876 = vmatpush3.msra.mxu0 %v2139_v17  ;;  %3897 = vmatpush3.msra.mxu1 %v2146_v18  ;;  %v2212_v17 = vld [vmem:[%s5333_s7 + $0xa8] sm:$0xff]  ;;  %v2214_v18 = vld [vmem:[%s5333_s7 + $0xb8] sm:$0xff] }
 0x263   : > { %3877 = vmatprep.subr.mxu0 %v4105_v1  ;;  %3898 = vmatprep.subr.mxu1 %v4105_v1 }
 0x264   : > { %3878 = vmatpush3.msra.mxu0 %v2138_v19  ;;  %3899 = vmatpush3.msra.mxu1 %v2145_v20  ;;  %v2211_v19 = vld [vmem:[%s5333_s7 + $0xa0] sm:$0xff]  ;;  %v2213_v20 = vld [vmem:[%s5333_s7 + $0xb0] sm:$0xff] }
 0x265   : > { %3879 = vmatprep.subr.mxu0 %v4105_v1  ;;  %3900 = vmatprep.subr.mxu1 %v4105_v1 }
 0x266   : > { %3880 = vmatpush3.msra.mxu0 %v2137_v21  ;;  %3901 = vmatpush3.msra.mxu1 %v2144_v22  ;;  %v2208_v21 = vld [vmem:[%s5333_s7 + $0x88] sm:$0xff]  ;;  %v2210_v22 = vld [vmem:[%s5333_s7 + $0x98] sm:$0xff] }
 0x267   : > { %3881 = vmatprep.subr.mxu0 %v4105_v1  ;;  %3902 = vmatprep.subr.mxu1 %v4105_v1 }
 0x268   : > { %3882 = vmatpush3.msra.mxu0 %v2136_v23  ;;  %3903 = vmatpush3.msra.mxu1 %v2143_v24  ;;  %v2207_v23 = vld [vmem:[%s5333_s7 + $0x80] sm:$0xff]  ;;  %v2209_v24 = vld [vmem:[%s5333_s7 + $0x90] sm:$0xff] }
 0x269   : > { %3883 = vmatprep.subr.mxu0 %v4105_v1  ;;  %3905 = vmatmul.mubr.msk.f32.vlgmr.msra.gmra.mxu1 %vm456_vm0, %v2443_v25  ;;  %v2204_v25 = vld [vmem:[%s5333_s7 + $0x68] sm:$0xff] }
 0x26a   : > { %3926 = vmatprep.subr.mxu1 %v4105_v1  ;;  %3884 = vmatpush3.msra.mxu0 %v2135_v26  ;;  %v2206_v26 = vld [vmem:[%s5333_s7 + $0x78] sm:$0xff] }
 0x26b   : > { %3885 = vmatprep.mubr.msk.f32.mxu0 %vm4106_vm9, %v4105_v1  ;;  %3927 = vmatpush3.msra.mxu1 %v2166_v27  ;;  %v2203_v27 = vld [vmem:[%s5333_s7 + $0x60] sm:$0xff] }
 0x26c   : > { %3886 = vmatmul.mubr.msk.f32.vlgmr.msra.gmra.mxu0 %vm456_vm0, %v2369_v28  ;;  %3907 = vmatprep.subr.mxu0 %v4105_v1  ;;  %v2205_v28 = vld [vmem:[%s5333_s7 + $0x70] sm:$0xff] }
 0x26d   : > { %3928 = vmatprep.subr.mxu1 %v4105_v1  ;;  %3908 = vmatpush3.msra.mxu0 %v2158_v29  ;;  %v2200_v29 = vld [vmem:[%s5333_s7 + $0x48] sm:$0xff] }
 0x26e   : > { %3929 = vmatpush3.msra.mxu1 %v2165_v30  ;;  %3909 = vmatprep.subr.mxu0 %v4105_v1  ;;  %v2202_v30 = vld [vmem:[%s5333_s7 + $0x58] sm:$0xff] }
 0x26f   : > { %3930 = vmatprep.subr.mxu1 %v4105_v1  ;;  %3910 = vmatpush3.msra.mxu0 %v2157_v31  ;;  %v2199_v31 = vld [vmem:[%s5333_s7 + $0x40] sm:$0xff] }
 0x270   : > { %3931 = vmatpush3.msra.mxu1 %v2164_v32  ;;  %3911 = vmatprep.subr.mxu0 %v4105_v1  ;;  %v2201_v32 = vld [vmem:[%s5333_s7 + $0x50] sm:$0xff] }
 0x271   : > { %3932 = vmatprep.subr.mxu1 %v4105_v1  ;;  %3912 = vmatpush3.msra.mxu0 %v2156_v33  ;;  %v2196_v33 = vld [vmem:[%s5333_s7 + $0x28] sm:$0xff] }
 0x272   : > { %3933 = vmatpush3.msra.mxu1 %v2163_v34  ;;  %3913 = vmatprep.subr.mxu0 %v4105_v1  ;;  %v2198_v34 = vld [vmem:[%s5333_s7 + $0x38] sm:$0xff] }
 0x273   : > { %3934 = vmatprep.subr.mxu1 %v4105_v1  ;;  %3914 = vmatpush3.msra.mxu0 %v2155_v35  ;;  %v2195_v35 = vld [vmem:[%s5333_s7 + $0x20] sm:$0xff] }
 0x274   : > { %3935 = vmatpush3.msra.mxu1 %v2162_v36  ;;  %3915 = vmatprep.subr.mxu0 %v4105_v1  ;;  %v2197_v36 = vld [vmem:[%s5333_s7 + $0x30] sm:$0xff] }
 0x275   : > { %3936 = vmatprep.subr.mxu1 %v4105_v1  ;;  %3916 = vmatpush3.msra.mxu0 %v2154_v37  ;;  %v2192_v37 = vld [vmem:[%s5333_s7 + $0x8] sm:$0xff] }
 0x276   : > { %3937 = vmatpush3.msra.mxu1 %v2161_v38  ;;  %3917 = vmatprep.subr.mxu0 %v4105_v1  ;;  %v2194_v38 = vld [vmem:[%s5333_s7 + $0x18] sm:$0xff] }
 0x277   : > { %3938 = vmatprep.subr.mxu1 %v4105_v1  ;;  %3918 = vmatpush3.msra.mxu0 %v2153_v39  ;;  %v2191_v39 = vld [vmem:[%s5333_s7] sm:$0xff] }
 0x278   : > { %3939 = vmatpush3.msra.mxu1 %v2160_v40  ;;  %3919 = vmatprep.subr.mxu0 %v4105_v1  ;;  %v2193_v40 = vld [vmem:[%s5333_s7 + $0x10] sm:$0xff] }
 0x279   : > { %3940 = vmatprep.subr.mxu1 %v4105_v1  ;;  %3920 = vmatpush3.msra.mxu0 %v2152_v41  ;;  %v3092_v41 = vld [vmem:[%s5335_s9 + $0xf8] sm:$0xff] }
 0x27a   : > { %3941 = vmatpush3.msra.mxu1 %v2159_v42  ;;  %3942 = vmatprep.mubr.msk.f32.mxu1 %vm4106_vm9, %v4105_v1  ;;  %v3124_v42 = vld [vmem:[%s5335_s9 + $0x1f8] sm:$0xff] }
 0x27b   : > { %3921 = vmatprep.subr.mxu0 %v4105_v1  ;;  %3943 = vmatmul.mubr.msk.f32.vlgmr.msra.gmra.mxu1 %vm456_vm0, %v2591_v5 }
 0x27c   : > { %3964 = vmatprep.subr.mxu1 %v4105_v1  ;;  %3922 = vmatpush3.msra.mxu0 %v2151_v43 }
 0x27d   : > { %3923 = vmatprep.mubr.msk.f32.mxu0 %vm4106_vm9, %v4105_v1  ;;  %3965 = vmatpush3.msra.mxu1 %v2182_v44 }
 0x27e   : > { %3924 = vmatmul.mubr.msk.f32.vlgmr.msra.gmra.mxu0 %vm456_vm0, %v2517_v45  ;;  %3945 = vmatprep.subr.mxu0 %v4105_v1 }
 0x27f   : > { %3966 = vmatprep.subr.mxu1 %v4105_v1  ;;  %3946 = vmatpush3.msra.mxu0 %v2174_v46 }
 0x280   : > { %3967 = vmatpush3.msra.mxu1 %v2181_v47  ;;  %3947 = vmatprep.subr.mxu0 %v4105_v1 }
 0x281   : > { %3968 = vmatprep.subr.mxu1 %v4105_v1  ;;  %3948 = vmatpush3.msra.mxu0 %v2173_v48 }
 0x282   : > { %3969 = vmatpush3.msra.mxu1 %v2180_v49  ;;  %3949 = vmatprep.subr.mxu0 %v4105_v1 }
 0x283   : > { %3970 = vmatprep.subr.mxu1 %v4105_v1  ;;  %3950 = vmatpush3.msra.mxu0 %v2172_v50 }
 0x284   : > { %3971 = vmatpush3.msra.mxu1 %v2179_v51  ;;  %3951 = vmatprep.subr.mxu0 %v4105_v1 }
 0x285   : > { %3972 = vmatprep.subr.mxu1 %v4105_v1  ;;  %3952 = vmatpush3.msra.mxu0 %v2171_v52 }
 0x286   : > { %3973 = vmatpush3.msra.mxu1 %v2178_v53  ;;  %3953 = vmatprep.subr.mxu0 %v4105_v1 }
 0x287   : > { %3974 = vmatprep.subr.mxu1 %v4105_v1  ;;  %3954 = vmatpush3.msra.mxu0 %v2170_v54 }
 0x288   : > { %3975 = vmatpush3.msra.mxu1 %v2177_v55  ;;  %3955 = vmatprep.subr.mxu0 %v4105_v1 }
 0x289   : > { %3976 = vmatprep.subr.mxu1 %v4105_v1  ;;  %3956 = vmatpush3.msra.mxu0 %v2169_v56 }
 0x28a   : > { %3977 = vmatpush3.msra.mxu1 %v2176_v57  ;;  %3957 = vmatprep.subr.mxu0 %v4105_v1 }
 0x28b   : > { %3978 = vmatprep.subr.mxu1 %v4105_v1  ;;  %3958 = vmatpush3.msra.mxu0 %v2168_v58 }
 0x28c   : > { %3979 = vmatpush3.msra.mxu1 %v2175_v59  ;;  %3980 = vmatprep.mubr.msk.f32.mxu1 %vm4106_vm9, %v4105_v1 }
 0x28d   : > { %3959 = vmatprep.subr.mxu0 %v4105_v1  ;;  %3981 = vmatmul.mubr.msk.f32.vlgmr.msra.gmra.mxu1 %vm456_vm0, %v2739_v60 }
 0x28e   : > { %3960 = vmatpush3.msra.mxu0 %v2167_v61  ;;  %3961 = vmatprep.mubr.msk.f32.mxu0 %vm4106_vm9, %v4105_v1 }
 0x28f   : > { %3962 = vmatmul.mubr.msk.f32.vlgmr.msra.gmra.mxu0 %vm456_vm0, %v2665_v62  ;;  %3983 = vmatprep.subr.mxu0 %v4105_v1 }
 0x290   : > { %3984 = vmatpush3.msra.mxu0 %v2190_v63  ;;  %3999 = vmatprep.mubr.msk.f32.mxu0 %vm4106_vm9, %v4105_v1 }
 0x291   : > { %3985 = vmatprep.subr.mxu0 %v4105_v1  ;;  %2979 = vmatprep.mubr.f32.mxu1 %v4105_v1 }
 0x292   : > { %3986 = vmatpush3.msra.mxu0 %v2189_v0  ;;  %2931 = vmatprep.subr.mxu1 %v2220_v11  ;;  %v3108_v11 = vld [vmem:[%s5335_s9 + $0x178] sm:$0xff] }
 0x293   : > { %3987 = vmatprep.subr.mxu0 %v4105_v1  ;;  %2932 = vmatpush1.msra.mxu1 %v2219_v13  ;;  %v3123_v13 = vld [vmem:[%s5335_s9 + $0x1f0] sm:$0xff] }
 0x294   : > { %3988 = vmatpush3.msra.mxu0 %v2188_v2 }
 0x295   : > { %3989 = vmatprep.subr.mxu0 %v4105_v1 }
 0x296   : > { %3990 = vmatpush3.msra.mxu0 %v2187_v3  ;;  %v2887_v3 = vld [vmem:[%s5332_s6] sm:$0x1] }
 0x297   : > { %3991 = vmatprep.subr.mxu0 %v4105_v1 }
 0x298   : > { %3992 = vmatpush3.msra.mxu0 %v2186_v6 }
 0x299   : > { %3993 = vmatprep.subr.mxu0 %v4105_v1 }
 0x29a   : > { %3994 = vmatpush3.msra.mxu0 %v2185_v7 }
 0x29b   : > { %3995 = vmatprep.subr.mxu0 %v4105_v1 }
 0x29c   : > { %3996 = vmatpush3.msra.mxu0 %v2184_v8 }
 0x29d   : > { %3997 = vmatprep.subr.mxu0 %v4105_v1 }
 0x29e   : > { %3998 = vmatpush3.msra.mxu0 %v2183_v9 }
 0x29f   : > { %4000 = vmatmul.mubr.msk.f32.vlgmr.msra.gmra.mxu0 %vm456_vm0, %v2118_v10  ;;  %3002 = vmatprep.subr.mxu0 %v2222_v12  ;;  %v3076_v10 = vld [vmem:[%s5335_s9 + $0x78] sm:$0xff]  ;;  %v3091_v12 = vld [vmem:[%s5335_s9 + $0xf0] sm:$0xff] }
 0x2a0   : > { %3050 = vmatprep.mubr.f32.mxu0 %v4105_v1  ;;  %v2216_v1 = vld [vmem:[%s5333_s7 + $0xc8] sm:$0xff]  ;;  %3003 = vmatpush1.msra.mxu0 %v2221_v4  ;;  %v3075_v4 = vld [vmem:[%s5335_s9 + $0x70] sm:$0xff] }
 0x2a1   : > { %2933 = vmatprep.subr.mxu1 %v2216_v1  ;;  %3004 = vmatprep.subr.mxu0 %v2218_v14  ;;  %v3107_v1 = vld [vmem:[%s5335_s9 + $0x170] sm:$0xff]  ;;  %v3090_v14 = vld [vmem:[%s5335_s9 + $0xe8] sm:$0xff] }
 0x2a2   : > { %2934 = vmatpush1.msra.mxu1 %v2215_v15  ;;  %3005 = vmatpush1.msra.mxu0 %v2217_v16  ;;  %v3122_v15 = vld [vmem:[%s5335_s9 + $0x1e8] sm:$0xff] }
 0x2a3   : > { %2935 = vmatprep.subr.mxu1 %v2212_v17  ;;  %3006 = vmatprep.subr.mxu0 %v2214_v18  ;;  %v3074_v16 = vld [vmem:[%s5335_s9 + $0x68] sm:$0xff]  ;;  %v3089_v18 = vld [vmem:[%s5335_s9 + $0xe0] sm:$0xff] }
 0x2a4   : > { %2936 = vmatpush1.msra.mxu1 %v2211_v19  ;;  %3007 = vmatpush1.msra.mxu0 %v2213_v20  ;;  %v3106_v17 = vld [vmem:[%s5335_s9 + $0x168] sm:$0xff]  ;;  %v3121_v19 = vld [vmem:[%s5335_s9 + $0x1e0] sm:$0xff] }
 0x2a5   : > { %2937 = vmatprep.subr.mxu1 %v2208_v21  ;;  %3008 = vmatprep.subr.mxu0 %v2210_v22  ;;  %v3073_v20 = vld [vmem:[%s5335_s9 + $0x60] sm:$0xff]  ;;  %v3088_v22 = vld [vmem:[%s5335_s9 + $0xd8] sm:$0xff] }
 0x2a6   : > { %2938 = vmatpush1.msra.mxu1 %v2207_v23  ;;  %3009 = vmatpush1.msra.mxu0 %v2209_v24  ;;  %v3105_v21 = vld [vmem:[%s5335_s9 + $0x160] sm:$0xff]  ;;  %v3120_v23 = vld [vmem:[%s5335_s9 + $0x1d8] sm:$0xff] }
 0x2a7   : > { %2939 = vmatprep.subr.mxu1 %v2204_v25  ;;  %3010 = vmatprep.subr.mxu0 %v2206_v26  ;;  %v3072_v24 = vld [vmem:[%s5335_s9 + $0x58] sm:$0xff]  ;;  %v3087_v26 = vld [vmem:[%s5335_s9 + $0xd0] sm:$0xff] }
 0x2a8   : > { %2940 = vmatpush1.msra.mxu1 %v2203_v27  ;;  %3011 = vmatpush1.msra.mxu0 %v2205_v28  ;;  %v3104_v25 = vld [vmem:[%s5335_s9 + $0x158] sm:$0xff]  ;;  %v3119_v27 = vld [vmem:[%s5335_s9 + $0x1d0] sm:$0xff] }
 0x2a9   : > { %2941 = vmatprep.subr.mxu1 %v2200_v29  ;;  %3012 = vmatprep.subr.mxu0 %v2202_v30  ;;  %v3071_v28 = vld [vmem:[%s5335_s9 + $0x50] sm:$0xff]  ;;  %v3086_v30 = vld [vmem:[%s5335_s9 + $0xc8] sm:$0xff] }
 0x2aa   : > { %2942 = vmatpush1.msra.mxu1 %v2199_v31  ;;  %3013 = vmatpush1.msra.mxu0 %v2201_v32  ;;  %v3103_v29 = vld [vmem:[%s5335_s9 + $0x150] sm:$0xff]  ;;  %v3118_v31 = vld [vmem:[%s5335_s9 + $0x1c8] sm:$0xff] }
 0x2ab   : > { %2943 = vmatprep.subr.mxu1 %v2196_v33  ;;  %3014 = vmatprep.subr.mxu0 %v2198_v34  ;;  %v3070_v32 = vld [vmem:[%s5335_s9 + $0x48] sm:$0xff]  ;;  %v3085_v34 = vld [vmem:[%s5335_s9 + $0xc0] sm:$0xff] }
 0x2ac   : > { %2944 = vmatpush1.msra.mxu1 %v2195_v35  ;;  %3015 = vmatpush1.msra.mxu0 %v2197_v36  ;;  %v3102_v33 = vld [vmem:[%s5335_s9 + $0x148] sm:$0xff]  ;;  %v3117_v35 = vld [vmem:[%s5335_s9 + $0x1c0] sm:$0xff] }
 0x2ad   : > { %2945 = vmatprep.subr.mxu1 %v2192_v37  ;;  %3016 = vmatprep.subr.mxu0 %v2194_v38  ;;  %v3069_v36 = vld [vmem:[%s5335_s9 + $0x40] sm:$0xff]  ;;  %v3084_v38 = vld [vmem:[%s5335_s9 + $0xb8] sm:$0xff] }
 0x2ae   : > { %2946 = vmatpush1.msra.mxu1 %v2191_v39  ;;  %3017 = vmatpush1.msra.mxu0 %v2193_v40  ;;  %v3101_v37 = vld [vmem:[%s5335_s9 + $0x140] sm:$0xff]  ;;  %v3116_v39 = vld [vmem:[%s5335_s9 + $0x1b8] sm:$0xff] }
 0x2af   : > { %3585 = vmatprep.subr.mxu1 %v3092_v41  ;;  %3620 = vmatprep.subr.mxu0 %v3124_v42  ;;  %v3068_v40 = vld [vmem:[%s5335_s9 + $0x38] sm:$0xff]  ;;  %v3083_v42 = vld [vmem:[%s5335_s9 + $0xb0] sm:$0xff] }
 0x2b0   : > { %v3100_v41 = vld [vmem:[%s5335_s9 + $0x138] sm:$0xff] }
 0x319   : > { %v2365_v5 = vpop.f32.mrf.mxu1 }
 0x31b   : > { %v2293_v43 = vpop.f32.mrf.mxu0  ;;  %v3868_v44 = vpop.f32.mrf.mxu1 }
 0x31c   : > { %v2366_v54 = vadd.f32 %v2365_v5, %v2293_v43  ;;  %v3115_v5 = vld [vmem:[%s5335_s9 + $0x1b0] sm:$0xff] }
 0x31d   : > { %v3849_v45 = vpop.f32.mrf.mxu0  ;;  %v3067_v43 = vld [vmem:[%s5335_s9 + $0x30] sm:$0xff] }
 0x31e   : > { %v3099_v44 = vld [vmem:[%s5335_s9 + $0x130] sm:$0xff]  ;;  %v3082_v45 = vld [vmem:[%s5335_s9 + $0xa8] sm:$0xff] }
 0x329   : > { %v2512_v46 = vpop.f32.mrf.mxu1 }
 0x32b   : > { %v3906_v47 = vpop.f32.mrf.mxu1 }
 0x32c   : > { %v2438_v48 = vpop.f32.mrf.mxu0  ;;  %v3066_v47 = vld [vmem:[%s5335_s9 + $0x28] sm:$0xff] }
 0x32d   : > { %v2442_v56 = vadd.f32 %v2438_v48, %v2366_v54  ;;  %v3098_v48 = vld [vmem:[%s5335_s9 + $0x128] sm:$0xff]  ;;  %v3112_v54 = vld [vmem:[%s5335_s9 + $0x198] sm:$0xff] }
 0x32e   : > { %v3887_v49 = vpop.f32.mrf.mxu0 }
 0x32f   : > { %v2516_v60 = vadd.f32 %v2512_v46, %v2442_v56  ;;  %v3114_v46 = vld [vmem:[%s5335_s9 + $0x1a8] sm:$0xff]  ;;  %v3081_v49 = vld [vmem:[%s5335_s9 + $0xa0] sm:$0xff]  ;;  %v3096_v56 = vld [vmem:[%s5335_s9 + $0x118] sm:$0xff] }
 0x33b   : > { %v2660_v50 = vpop.f32.mrf.mxu1 }
 0x33d   : > { %v3944_v51 = vpop.f32.mrf.mxu1 }
 0x33e   : > { %v2586_v52 = vpop.f32.mrf.mxu0  ;;  %v3065_v51 = vld [vmem:[%s5335_s9 + $0x20] sm:$0xff] }
 0x33f   : > { %v2590_v61 = vadd.f32 %v2586_v52, %v2516_v60  ;;  %v3097_v52 = vld [vmem:[%s5335_s9 + $0x120] sm:$0xff]  ;;  %v3095_v60 = vld [vmem:[%s5335_s9 + $0x110] sm:$0xff] }
 0x340   : > { %v3925_v53 = vpop.f32.mrf.mxu0 }
 0x341   : > { %v2664_v62 = vadd.f32 %v2660_v50, %v2590_v61  ;;  %v3113_v50 = vld [vmem:[%s5335_s9 + $0x1a0] sm:$0xff]  ;;  %v3080_v53 = vld [vmem:[%s5335_s9 + $0x98] sm:$0xff]  ;;  %v3078_v61 = vld [vmem:[%s5335_s9 + $0x88] sm:$0xff] }
 0x34d   : > { %v2808_v55 = vpop.f32.mrf.mxu1 }
 0x34f   : > { %v2734_v57 = vpop.f32.mrf.mxu0  ;;  %v3982_v58 = vpop.f32.mrf.mxu1 }
 0x350   : > { %v2738_v63 = vadd.f32 %v2734_v57, %v2664_v62  ;;  %v3079_v57 = vld [vmem:[%s5335_s9 + $0x90] sm:$0xff]  ;;  %v3110_v62 = vld [vmem:[%s5335_s9 + $0x188] sm:$0xff] }
 0x351   : > { %v3963_v59 = vpop.f32.mrf.mxu0  ;;  %v3111_v58 = vld [vmem:[%s5335_s9 + $0x190] sm:$0xff] }
 0x352   : > { %v2812_v0 = vadd.f32 %v2808_v55, %v2738_v63  ;;  %v3064_v55 = vld [vmem:[%s5335_s9 + $0x18] sm:$0xff]  ;;  %v3063_v59 = vld [vmem:[%s5335_s9 + $0x10] sm:$0xff]  ;;  %v3062_v63 = vld [vmem:[%s5335_s9 + $0x8] sm:$0xff] }
 0x35f   : > { %v2882_v2 = vpop.f32.mrf.mxu0 }
 0x360   : > { %v2886_v6 = vadd.f32 %v2882_v2, %v2812_v0  ;;  %v3094_v0 = vld [vmem:[%s5335_s9 + $0x108] sm:$0xff]  ;;  %v3077_v2 = vld [vmem:[%s5335_s9 + $0x80] sm:$0xff] }
 0x361   : > { %v4001_v7 = vpop.f32.mrf.mxu0 }
 0x362   : > { %v2888_v8 = vadd.f32 %v2887_v3, %v2886_v6  ;;  %v3109_v3 = vld [vmem:[%s5335_s9 + $0x180] sm:$0xff] }
 0x363   : > { %v3061_v6 = vld [vmem:[%s5335_s9] sm:$0xff] }
 0x364   : > { %v2889_v9 = vmax.f32 %v2888_v8, 0.0  ;;  %v3093_v7 = vld [vmem:[%s5335_s9 + $0x100] sm:$0xff]  ;;  %v2892_v8 = vlaneseq }
 0x366   : > { %3402 = vmatmul.mubr.msk.f32.vlgmr.msra.gmra.mxu1 %vm456_vm0, %v2889_v9  ;;  %3403 = vmatmul.mubr.msk.f32.vlgmr.msra.gmra.mxu0 %vm456_vm0, %v2889_v9  ;;  %v2893_v9 = vshrl.u32 %v2892_v8, 7 }
 0x367   : > { %3586 = vmatpush3.msra.mxu1 %v3076_v10  ;;  %3621 = vmatpush3.msra.mxu0 %v3108_v11 }
 0x368   : > { %3587 = vmatprep.subr.mxu1 %v3091_v12  ;;  %3622 = vmatprep.subr.mxu0 %v3123_v13  ;;  %v2894_v10 = vsub.s32 0, %v2893_v9  ;;  %v2902_v11 = vsub.s32 2, %v2893_v9  ;;  %v2890_v12 = vld [vmem:[%s5334_s8] sm:$0xf]  ;;  %v2898_v13 = vsub.s32 1, %v2893_v9 }
 0x369   : > { %3588 = vmatpush3.msra.mxu1 %v3075_v4  ;;  %3623 = vmatpush3.msra.mxu0 %v3107_v1  ;;  %v2906_v4 = vsub.s32 3, %v2893_v9 }
 0x36a   : > { %3589 = vmatprep.subr.mxu1 %v3090_v14  ;;  %3624 = vmatprep.subr.mxu0 %v3122_v15  ;;  %v2895_v1 = vrot.slane %v2890_v12, %v2894_v10  ;;  %v2903_v14 = vrot.slane %v2890_v12, %v2902_v11  ;;  %v2899_v15 = vrot.slane %v2890_v12, %v2898_v13 }
 0x36b   : > { %3590 = vmatpush3.msra.mxu1 %v3074_v16  ;;  %3625 = vmatpush3.msra.mxu0 %v3106_v17  ;;  %v2907_v16 = vrot.slane %v2890_v12, %v2906_v4 }
 0x36c   : > { %3591 = vmatprep.subr.mxu1 %v3089_v18  ;;  %3626 = vmatprep.subr.mxu0 %v3121_v19 }
 0x36d   : > { %3592 = vmatpush3.msra.mxu1 %v3073_v20  ;;  %3627 = vmatpush3.msra.mxu0 %v3105_v21 }
 0x36e   : > { %3593 = vmatprep.subr.mxu1 %v3088_v22  ;;  %3628 = vmatprep.subr.mxu0 %v3120_v23 }
 0x36f   : > { %3594 = vmatpush3.msra.mxu1 %v3072_v24  ;;  %3629 = vmatpush3.msra.mxu0 %v3104_v25 }
 0x370   : > { %3595 = vmatprep.subr.mxu1 %v3087_v26  ;;  %3630 = vmatprep.subr.mxu0 %v3119_v27 }
 0x371   : > { %3596 = vmatpush3.msra.mxu1 %v3071_v28  ;;  %3631 = vmatpush3.msra.mxu0 %v3103_v29 }
 0x372   : > { %3597 = vmatprep.subr.mxu1 %v3086_v30  ;;  %3632 = vmatprep.subr.mxu0 %v3118_v31  ;;  %v3125_v31 = vld [vmem:[%s5336_s10] sm:$0x1] }
 0x373   : > { %3598 = vmatpush3.msra.mxu1 %v3070_v32  ;;  %3633 = vmatpush3.msra.mxu0 %v3102_v33 }
 0x374   : > { %3599 = vmatprep.subr.mxu1 %v3085_v34  ;;  %3634 = vmatprep.subr.mxu0 %v3117_v35 }
 0x375   : > { %3600 = vmatpush3.msra.mxu1 %v3069_v36  ;;  %3635 = vmatpush3.msra.mxu0 %v3101_v37 }
 0x376   : > { %3601 = vmatprep.subr.mxu1 %v3084_v38  ;;  %3636 = vmatprep.subr.mxu0 %v3116_v39 }
 0x377   : > { %3602 = vmatpush3.msra.mxu1 %v3068_v40  ;;  %3637 = vmatpush3.msra.mxu0 %v3100_v41 }
 0x378   : > { %3603 = vmatprep.subr.mxu1 %v3083_v42  ;;  %3638 = vmatprep.subr.mxu0 %v3115_v5 }
 0x379   : > { %3604 = vmatpush3.msra.mxu1 %v3067_v43  ;;  %3639 = vmatpush3.msra.mxu0 %v3099_v44 }
 0x37a   : > { %3605 = vmatprep.subr.mxu1 %v3082_v45  ;;  %3640 = vmatprep.subr.mxu0 %v3114_v46 }
 0x37b   : > { %3606 = vmatpush3.msra.mxu1 %v3066_v47  ;;  %3641 = vmatpush3.msra.mxu0 %v3098_v48 }
 0x37c   : > { %3607 = vmatprep.subr.mxu1 %v3081_v49  ;;  %3642 = vmatprep.subr.mxu0 %v3113_v50 }
 0x37d   : > { %3608 = vmatpush3.msra.mxu1 %v3065_v51  ;;  %3643 = vmatpush3.msra.mxu0 %v3097_v52 }
 0x37e   : > { %3609 = vmatprep.subr.mxu1 %v3080_v53  ;;  %3644 = vmatprep.subr.mxu0 %v3112_v54 }
 0x37f   : > { %3610 = vmatpush3.msra.mxu1 %v3064_v55  ;;  %3645 = vmatpush3.msra.mxu0 %v3096_v56 }
 0x380   : > { %3611 = vmatprep.subr.mxu1 %v3079_v57  ;;  %3646 = vmatprep.subr.mxu0 %v3111_v58 }
 0x381   : > { %3612 = vmatpush3.msra.mxu1 %v3063_v59  ;;  %3647 = vmatpush3.msra.mxu0 %v3095_v60 }
 0x382   : > { %3613 = vmatprep.subr.mxu1 %v3078_v61  ;;  %3648 = vmatprep.subr.mxu0 %v3110_v62 }
 0x383   : > { %3614 = vmatpush3.msra.mxu1 %v3062_v63  ;;  %3649 = vmatpush3.msra.mxu0 %v3094_v0 }
 0x384   : > { %3615 = vmatprep.subr.mxu1 %v3077_v2  ;;  %3650 = vmatprep.subr.mxu0 %v3109_v3 }
 0x385   : > { %3616 = vmatpush3.msra.mxu1 %v3061_v6  ;;  %3651 = vmatpush3.msra.mxu0 %v3093_v7 }
 0x426   : > { %v2981_v17 = vpop.f32.mrf.mxu1  ;;  %v3052_v18 = vpop.f32.mrf.mxu0 }
 0x427   : > { %v2982_v19 = vadd.f32 %v2981_v17, %v2895_v1  ;;  %v3053_v20 = vadd.f32 %v3052_v18, %v2903_v14 }
 0x428   : > { %v2983_v21 = vpop.f32.mrf.mxu1  ;;  %v3054_v22 = vpop.f32.mrf.mxu0 }
 0x429   : > { %v2984_v23 = vadd.f32 %v2983_v21, %v2899_v15  ;;  %v3055_v24 = vadd.f32 %v3054_v22, %v2907_v16  ;;  %v3057_v27 = vmax.f32 %v2982_v19, 0.0  ;;  %v3059_v28 = vmax.f32 %v3053_v20, 0.0 }
 0x42b   : > { %v3058_v25 = vmax.f32 %v2984_v23, 0.0  ;;  %v3060_v26 = vmax.f32 %v3055_v24, 0.0 }
 0x42d   : > { %3190 = vmatprep.mubr.f32.mxu1 %v3058_v25  ;;  %3260 = vmatprep.mubr.f32.mxu0 %v3060_v26 }
 0x42e   : > { %3191 = vmatmul.mubr.f32.vlgmr.msra.gmra.mxu1 %v3057_v27  ;;  %3261 = vmatmul.mubr.f32.vlgmr.msra.gmra.mxu0 %v3059_v28 }
 0x4ee   : > { %v3617_v29 = vpop.f32.mrf.mxu1  ;;  %v3652_v30 = vpop.f32.mrf.mxu0 }
 0x4f0   : > { %v3618_v32 = vpop.f32.mrf.mxu1  ;;  %v3653_v33 = vpop.f32.mrf.mxu0 }
 0x4f1   : > { %v3619_v34 = vadd.f32 %v3618_v32, %v3617_v29  ;;  %v3654_v36 = vadd.f32 %v3653_v33, %v3652_v30 }
 0x4f3   : > { %v3193_v35 = vadd.f32 %v3619_v34, %v3125_v31 }
 0x4f5   : > { %v3263_v37 = vadd.f32 %v3654_v36, %v3193_v35 }
 0x4f7   : > { %3266 = vst [vmem:[%s381_s15] sm:$0x1] %v3263_v37 }
 0x4f8   : > { %4056 = shalt.err (!%p4053_p3)
}
 0x4f9   : > { %s4057_s1 = scalar_lea.hbm %s3278_s12, 16  ;;  %s4061_s15 = scalar_lea.hbm %s5337_s11, 32 }
 0x4fa   : > { %p4058_p4 = scmp.ne.s32.totalorder %s3278_s12, %s4057_s1  ;;  %p4062_p9 = scmp.lt.s32.totalorder %s3278_s12, %s5337_s11 }
 0x4fb   : > { %p4063_p10 = scmp.lt.s32.totalorder %s4061_s15, %s4057_s1 }
 0x4fc   : > { %p4059_p7 = pnand %p4058_p4, %p4206_p5 }
 0x4fd   : > { %p4064_p11 = por %p4063_p10, %p4062_p9 }
 0x4fe   : > { %p4060_p8 = pneg %p4059_p7 }
 0x500   : > { %p4065_p12 = pnand %p4064_p11, %p4060_p8 }
 0x502   : > { %4068 = shalt.err (!%p4065_p12)
}
 0x503   : > { %4002 = dma.vmem_to_hbm [thread:$0]  (%p4206_p5), %s3281_s14, 16, %s3278_s12, %s3268_s24  }
 0x504 PF: > { %p4008_p13 = scmp.ge.s32.totalorder %s4103_s20, 2  ;;  %s3292_s0 = sand.u32 1, %s4091_s17  }
 0x505   : > { %s3293_s29 = scalar_lea.sflag [#allocation3], %s3292_s0 }
 0x506   : > { %p4005_p0 = pnand %p4008_p13, %p4210_p6 }
 0x508   : > { %p4006_p1 = pneg %p4005_p0 }
 0x50a   : > { %4086 = dma.done.wait (%p4006_p1), %s3293_s29, 16  }
 0x50b   : > { %4088 = vsyncadd (%p4006_p1), %s3293_s29, 4294967280  ;;  %p21_p2 = scmp.ge.s32.totalorder %s4193_s23, 4   ;;  %s5344_s17 = smov %s4095_s18 }
 0x50c   : > { %s5345_s18 = smov %s4099_s19  ;;  %s5346_s19 = smov %s4204_s26 }
 0x50d   : > { %s5347_s20 = smov %s4193_s23  ;;  %23 = sbr.rel (!%p21_p2) target bundleno = 6 (0x6), region = 99 }
 0x512   :  { %3297 = vsyncpa [#allocation3], 1 }
 0x513   :  { %3299 = vsyncpa [#allocation3 + $0x1], 1 }

</bundles_post_ra>
